<compile_context>
chip_gen: v7x
topology: tpu7x:2x2x1
jax: 0.10.0
libtpu: 0.0.40
codegen_flags: <defaults>
</compile_context>

<pallas_src>
import jax
import jax.numpy as jnp
from jax.experimental import pallas as pl
from jax.experimental.pallas import tpu as pltpu


# ----------------------------- fused kernel -----------------------------

def _fused_forward_kernel(x_ref,
                          rhs1_ref, brow1_ref, t1_ref,
                          rhs2_ref, brow2_ref, t2_ref,
                          fc1w_ref, fc1b_ref, fc2w_ref, fc2b_ref,
                          fc3w_ref, fc3b_ref,
                          o_ref):
    """Whole forward pass for one batch tile; activations laid out (H, TB, lanes)."""
    x = x_ref[...]                                       # (32, TB, 96) f32, lanes = c*32+w
    tb = x.shape[1]

    def mm(a, b):                                        # bf16 MXU matmul, f32 accumulate
        return jnp.dot(a.astype(jnp.bfloat16), b,
                       preferred_element_type=jnp.float32)

    # ---- conv1 (5x5, 3->6) + bias + relu : one big-M matmul ------------------
    # im2col over kh only: 5 lane-concat pieces of 96 lanes -> lanes (kh, c, w)
    lhs1 = jnp.concatenate([x[kh:kh + 28] for kh in range(5)], axis=-1)   # (28, TB, 480)
    y1 = jnp.maximum(mm(lhs1.reshape(28 * tb, 480), rhs1_ref[...])
                     + brow1_ref[...], 0.0)                               # (28*TB, 168)

    # ---- maxpool 2x2 stage 1: rows via free reshape + VPU max, cols via fused selector
    y1 = y1.reshape(14, 2, tb, 168)
    rp1 = jnp.maximum(y1[:, 0], y1[:, 1]).reshape(14 * tb, 168)
    pc1 = mm(rp1, t1_ref[...])                                            # (14*TB, 168)
    p1 = jnp.maximum(pc1[:, :84], pc1[:, 84:]).reshape(14, tb, 84)        # lanes (o, w)

    # ---- conv2 (5x5, 6->16) + bias + relu ------------------------------------
    lhs2 = jnp.concatenate([p1[kh:kh + 10] for kh in range(5)], axis=-1)  # (10, TB, 420)
    y2 = jnp.maximum(mm(lhs2.reshape(10 * tb, 420), rhs2_ref[...])
                     + brow2_ref[...], 0.0)                               # (10*TB, 160)

    # ---- maxpool 2x2 stage 2 --------------------------------------------------
    y2 = y2.reshape(5, 2, tb, 160)
    rp2 = jnp.maximum(y2[:, 0], y2[:, 1]).reshape(5 * tb, 160)
    pc2 = mm(rp2, t2_ref[...])                                            # (5*TB, 160)
    p2 = jnp.maximum(pc2[:, :80], pc2[:, 80:]).reshape(5, tb, 80)         # lanes (o, w)

    # ---- flatten in registers (h, o, w) + FC stack ----------------------------
    # fc1's weight rows were pre-permuted on the host to this (h, o, w) order.
    flat = jnp.concatenate([p2[h] for h in range(5)], axis=-1)            # (TB, 400)
    h1 = jnp.maximum(mm(flat, fc1w_ref[...]) + fc1b_ref[...], 0.0)        # (TB, 120)
    h2 = jnp.maximum(mm(h1, fc2w_ref[...]) + fc2b_ref[...], 0.0)          # (TB, 84)
    logits = mm(h2, fc3w_ref[...]) + fc3b_ref[...]                        # (TB, 3)

    # ---- softmax (exact division -> rows sum to 1) ----------------------------
    m = jnp.max(logits, axis=-1, keepdims=True)
    e = jnp.exp(logits - m)
    o_ref[...] = e / jnp.sum(e, axis=-1, keepdims=True)


# ------------------------ host-side operand prep ------------------------

def _band_rhs(w, w_in, w_out):
    """Fold the kw taps of a (cout,cin,K,K) conv weight into a banded matmul RHS.

    Rows ordered (kh, cin, w_in) to match the kernel's kh-major im2col lanes;
    cols ordered (cout, w_out).
    """
    cout, cin, K, _ = w.shape
    u = jnp.arange(w_in)
    wo = jnp.arange(w_out)
    diff = u[:, None] - wo[None, :]                       # (w_in, w_out)
    mask = ((diff >= 0) & (diff < K)).astype(w.dtype)
    kw_idx = jnp.clip(diff, 0, K - 1)
    band = w[:, :, :, kw_idx] * mask[None, None, None]    # (cout,cin,K,w_in,w_out)
    band = band.transpose(2, 1, 3, 0, 4)                  # (K,cin,w_in,cout,w_out)
    return band.reshape(cin * K * w_in, cout * w_out)


def _pool_col_selector(cout, w_in, w_out):
    """Fused (cout*w_in, 2*cout*w_out) 0/1 selector: first half picks even w,
    second half picks odd w; output columns ordered (cout, w_out)."""
    rows = jnp.arange(cout * w_in)
    cols = jnp.arange(cout * w_out)
    o_r, u = rows // w_in, rows % w_in
    o_c, wp = cols // w_out, cols % w_out

    def half(off):
        return ((o_r[:, None] == o_c[None, :]) &
                (u[:, None] == 2 * wp[None, :] + off)).astype(jnp.float32)

    return jnp.concatenate([half(0), half(1)], axis=1)


def _prepare_operands(params):
    bf = jnp.bfloat16
    ops = {}
    ops["rhs1"] = _band_rhs(params["conv1_w"], 32, 28).astype(bf)     # (480, 168)
    ops["brow1"] = jnp.repeat(params["conv1_b"], 28)[None, :]         # (1, 168) f32
    ops["t1"] = _pool_col_selector(6, 28, 14).astype(bf)              # (168, 168)
    ops["rhs2"] = _band_rhs(params["conv2_w"], 14, 10).astype(bf)     # (420, 160)
    ops["brow2"] = jnp.repeat(params["conv2_b"], 10)[None, :]         # (1, 160) f32
    ops["t2"] = _pool_col_selector(16, 10, 5).astype(bf)              # (160, 160)
    # Reorder fc1's rows from PyTorch's (o, h, w) flatten to the kernel's (h, o, w).
    hh = jnp.arange(5)[:, None, None]
    oo = jnp.arange(16)[None, :, None]
    ww = jnp.arange(5)[None, None, :]
    old_rows = (oo * 25 + hh * 5 + ww).reshape(-1)       # new (h,o,w) -> old row
    ops["fc1_w"] = params["fc1_w"][old_rows, :].astype(bf)            # (400, 120)
    ops["fc1_b"] = params["fc1_b"][None, :]
    ops["fc2_w"] = params["fc2_w"].astype(bf)
    ops["fc2_b"] = params["fc2_b"][None, :]
    ops["fc3_w"] = params["fc3_w"].astype(bf)
    ops["fc3_b"] = params["fc3_b"][None, :]
    return ops


_OPERAND_ORDER = ("rhs1", "brow1", "t1", "rhs2", "brow2", "t2",
                  "fc1_w", "fc1_b", "fc2_w", "fc2_b", "fc3_w", "fc3_b")


def _const_spec(arr):
    n = arr.ndim
    return pl.BlockSpec(arr.shape, lambda i, _n=n: (0,) * _n)


def _choose_tile(b8, tile_b):
    # Prefer >=2 grid steps (v7x has 2 TensorCores); keep tiles a multiple of 8.
    if b8 >= 16:
        half = max(8, (b8 // 2) // 8 * 8)
        return min(tile_b, half)
    return b8


# ----------------------------- forward -----------------------------

def gate_cnn_softmax_forward(params, x_nchw, tile_b=32):
    """x_nchw: (B, 3, 32, 32) float32 -> (B, 3) softmax probabilities."""
    B = x_nchw.shape[0]
    x = x_nchw.astype(jnp.float32)
    # Host relayout to (H=32, B, C*W=96): H leads (free in-kernel row pooling and
    # kh im2col slices), batch on sublanes, 96 lane-dense features.
    x_t = jnp.transpose(x, (2, 0, 1, 3)).reshape(32, B, 96)

    b8 = ((B + 7) // 8) * 8
    tb = _choose_tile(b8, tile_b)
    bp = ((b8 + tb - 1) // tb) * tb
    if bp > B:
        x_t = jnp.concatenate(
            [x_t, jnp.zeros((32, bp - B, 96), jnp.float32)], axis=1)
    grid = (bp // tb,)

    ops = _prepare_operands(params)
    consts = [ops[k] for k in _OPERAND_ORDER]

    in_specs = [pl.BlockSpec((32, tb, 96), lambda i: (0, i, 0))]
    in_specs += [_const_spec(a) for a in consts]

    flops_per_sample = 2 * (28 * 480 * 168 + 14 * 168 * 168 + 10 * 420 * 160
                            + 5 * 160 * 160 + 400 * 120 + 120 * 84 + 84 * 3)
    const_bytes = sum(int(a.size) * a.dtype.itemsize for a in consts)
    cost = pl.CostEstimate(
        flops=int(flops_per_sample) * int(bp),
        transcendentals=3 * int(bp),
        bytes_accessed=int(bp) * (32 * 96 * 4 + 3 * 4) + int(const_bytes))

    out = pl.pallas_call(
        _fused_forward_kernel,
        out_shape=jax.ShapeDtypeStruct((bp, 3), jnp.float32),
        grid=grid,
        in_specs=in_specs,
        out_specs=pl.BlockSpec((tb, 3), lambda i: (i, 0)),
        compiler_params=pltpu.CompilerParams(
            dimension_semantics=("parallel",),
            vmem_limit_bytes=32 * 1024 * 1024),
        cost_estimate=cost,
    )(x_t, *consts)
    return out[:B]


# ----------------------------- parameters -----------------------------

def init_params(key):
    def uinit(k, shape, fan_in):
        bound = 1.0 / jnp.sqrt(fan_in)
        return jax.random.uniform(k, shape, jnp.float32, -bound, bound)

    ks = jax.random.split(key, 10)
    return {
        # conv weights kept in PyTorch layout (Cout, Cin, K, K)
        "conv1_w": uinit(ks[0], (6, 3, 5, 5), 3 * 5 * 5),
        "conv1_b": uinit(ks[1], (6,), 3 * 5 * 5),
        "conv2_w": uinit(ks[2], (16, 6, 5, 5), 6 * 5 * 5),
        "conv2_b": uinit(ks[3], (16,), 6 * 5 * 5),
        # fc weights stored as (in, out) so the kernel does x @ W + b
        "fc1_w": uinit(ks[4], (400, 120), 400),
        "fc1_b": uinit(ks[5], (120,), 400),
        "fc2_w": uinit(ks[6], (120, 84), 120),
        "fc2_b": uinit(ks[7], (84,), 120),
        "fc3_w": uinit(ks[8], (84, 3), 84),
        "fc3_b": uinit(ks[9], (3,), 84),
    }


# ----------------------------- reference (pure JAX, f32) -----------------------------

def _reference_forward(params, x):
    dn = ("NCHW", "OIHW", "NCHW")
    y = jax.lax.conv_general_dilated(x, params["conv1_w"], (1, 1), "VALID",
                                     dimension_numbers=dn)
    y = jax.nn.relu(y + params["conv1_b"][None, :, None, None])
    y = jax.lax.reduce_window(y, -jnp.inf, jax.lax.max,
                              (1, 1, 2, 2), (1, 1, 2, 2), "VALID")
    y = jax.lax.conv_general_dilated(y, params["conv2_w"], (1, 1), "VALID",
                                     dimension_numbers=dn)
    y = jax.nn.relu(y + params["conv2_b"][None, :, None, None])
    y = jax.lax.reduce_window(y, -jnp.inf, jax.lax.max,
                              (1, 1, 2, 2), (1, 1, 2, 2), "VALID")
    f = y.reshape(y.shape[0], -1)                     # PyTorch view(-1, 400)
    h1 = jax.nn.relu(f @ params["fc1_w"] + params["fc1_b"])
    h2 = jax.nn.relu(h1 @ params["fc2_w"] + params["fc2_b"])
    logits = h2 @ params["fc3_w"] + params["fc3_b"]
    return jax.nn.softmax(logits, axis=-1)


if __name__ == "__main__":
    key = jax.random.PRNGKey(0)
    k_param, k_x = jax.random.split(key)
    params = init_params(k_param)
    # input shape implied by fc1 = Linear(16*5*5, ...): (B, 3, 32, 32)
    x = jax.random.normal(k_x, (2, 3, 32, 32), dtype=jnp.float32)

    out = jax.block_until_ready(gate_cnn_softmax_forward(params, x))
    ref = jax.block_until_ready(_reference_forward(params, x))

    assert out.shape == (2, 3)
    assert bool(jnp.all(jnp.isfinite(out)))
    assert bool(jnp.all(out >= 0.0))
    # exact softmax division -> rows sum to 1 at f32 precision
    assert bool(jnp.all(jnp.abs(jnp.sum(out, axis=-1) - 1.0) < 1e-5))
    # bf16 MXU operands with f32 accumulation vs the pure-f32 reference
    err = float(jnp.max(jnp.abs(out - ref)))
    assert err < 2e-2, err
    print("KERNEL_OK")
</pallas_src>

<mosaic_0001>
module attributes {stable_mosaic.version = 11 : i64} {
  func.func @_fused_forward_kernel(%arg0: i32, %arg1: memref<32x8x96xf32, #tpu.memory_space<vmem>>, %arg2: memref<480x168xbf16, #tpu.memory_space<vmem>>, %arg3: memref<1x168xf32, #tpu.memory_space<vmem>>, %arg4: memref<168x168xbf16, #tpu.memory_space<vmem>>, %arg5: memref<420x160xbf16, #tpu.memory_space<vmem>>, %arg6: memref<1x160xf32, #tpu.memory_space<vmem>>, %arg7: memref<160x160xbf16, #tpu.memory_space<vmem>>, %arg8: memref<400x120xbf16, #tpu.memory_space<vmem>>, %arg9: memref<1x120xf32, #tpu.memory_space<vmem>>, %arg10: memref<120x84xbf16, #tpu.memory_space<vmem>>, %arg11: memref<1x84xf32, #tpu.memory_space<vmem>>, %arg12: memref<84x3xbf16, #tpu.memory_space<vmem>>, %arg13: memref<1x3xf32, #tpu.memory_space<vmem>>, %arg14: memref<8x3xf32, #tpu.memory_space<vmem>>) attributes {dimension_semantics = [#tpu.dimension_semantics<parallel>], iteration_bounds = array<i64: 1>, scalar_prefetch = 0 : i64, scratch_operands = 0 : i64, tpu.core_type = #tpu.core_type<tc>, window_params = [{transform_indices = @transform_0, window_bounds = array<i64: 32, 8, 96>}, {pipeline_mode = #tpu.pipeline_mode<synchronous>, transform_indices = @transform_1, window_bounds = array<i64: 480, 168>}, {pipeline_mode = #tpu.pipeline_mode<synchronous>, transform_indices = @transform_2, window_bounds = array<i64: 1, 168>}, {pipeline_mode = #tpu.pipeline_mode<synchronous>, transform_indices = @transform_3, window_bounds = array<i64: 168, 168>}, {pipeline_mode = #tpu.pipeline_mode<synchronous>, transform_indices = @transform_4, window_bounds = array<i64: 420, 160>}, {pipeline_mode = #tpu.pipeline_mode<synchronous>, transform_indices = @transform_5, window_bounds = array<i64: 1, 160>}, {pipeline_mode = #tpu.pipeline_mode<synchronous>, transform_indices = @transform_6, window_bounds = array<i64: 160, 160>}, {pipeline_mode = #tpu.pipeline_mode<synchronous>, transform_indices = @transform_7, window_bounds = array<i64: 400, 120>}, {pipeline_mode = #tpu.pipeline_mode<synchronous>, transform_indices = @transform_8, window_bounds = array<i64: 1, 120>}, {pipeline_mode = #tpu.pipeline_mode<synchronous>, transform_indices = @transform_9, window_bounds = array<i64: 120, 84>}, {pipeline_mode = #tpu.pipeline_mode<synchronous>, transform_indices = @transform_10, window_bounds = array<i64: 1, 84>}, {pipeline_mode = #tpu.pipeline_mode<synchronous>, transform_indices = @transform_11, window_bounds = array<i64: 84, 3>}, {pipeline_mode = #tpu.pipeline_mode<synchronous>, transform_indices = @transform_12, window_bounds = array<i64: 1, 3>}, {transform_indices = @transform_13, window_bounds = array<i64: 8, 3>}]} {
    %c0 = arith.constant 0 : index
    %c0_0 = arith.constant 0 : index
    %c0_1 = arith.constant 0 : index
    %0 = vector.load %arg1[%c0, %c0_0, %c0_1] : memref<32x8x96xf32, #tpu.memory_space<vmem>>, vector<32x8x96xf32>
    %1 = vector.extract_strided_slice %0 {offsets = [0, 0, 0], sizes = [28, 8, 96], strides = [1, 1, 1]} : vector<32x8x96xf32> to vector<28x8x96xf32>
    %2 = vector.extract_strided_slice %0 {offsets = [1, 0, 0], sizes = [28, 8, 96], strides = [1, 1, 1]} : vector<32x8x96xf32> to vector<28x8x96xf32>
    %3 = vector.extract_strided_slice %0 {offsets = [2, 0, 0], sizes = [28, 8, 96], strides = [1, 1, 1]} : vector<32x8x96xf32> to vector<28x8x96xf32>
    %4 = vector.extract_strided_slice %0 {offsets = [3, 0, 0], sizes = [28, 8, 96], strides = [1, 1, 1]} : vector<32x8x96xf32> to vector<28x8x96xf32>
    %5 = vector.extract_strided_slice %0 {offsets = [4, 0, 0], sizes = [28, 8, 96], strides = [1, 1, 1]} : vector<32x8x96xf32> to vector<28x8x96xf32>
    %6 = tpu.concatenate %1, %2, %3, %4, %5 in 2 : vector<28x8x96xf32>, vector<28x8x96xf32>, vector<28x8x96xf32>, vector<28x8x96xf32>, vector<28x8x96xf32> -> vector<28x8x480xf32>
    %7 = vector.shape_cast %6 : vector<28x8x480xf32> to vector<224x480xf32>
    %c0_2 = arith.constant 0 : index
    %c0_3 = arith.constant 0 : index
    %8 = vector.load %arg2[%c0_2, %c0_3] : memref<480x168xbf16, #tpu.memory_space<vmem>>, vector<480x168xbf16>
    %9 = arith.truncf %7 : vector<224x480xf32> to vector<224x480xbf16>
    %cst = arith.constant dense<0.000000e+00> : vector<224x168xf32>
    %10 = tpu.matmul %9, %8, %cst {dimension_numbers = #tpu.dot_dimension_numbers<[1], [0], [0], [1], [0, 0, 1, 1], [], []>} : vector<224x480xbf16>, vector<480x168xbf16>, vector<224x168xf32> -> vector<224x168xf32>
    %c0_4 = arith.constant 0 : index
    %c0_5 = arith.constant 0 : index
    %11 = vector.load %arg3[%c0_4, %c0_5] : memref<1x168xf32, #tpu.memory_space<vmem>>, vector<1x168xf32>
    %12 = vector.broadcast %11 : vector<1x168xf32> to vector<224x168xf32>
    %13 = arith.addf %10, %12 : vector<224x168xf32>
    %cst_6 = arith.constant 0.000000e+00 : f32
    %14 = vector.broadcast %cst_6 : f32 to vector<224x168xf32>
    %15 = arith.maximumf %13, %14 : vector<224x168xf32>
    %16 = vector.shape_cast %15 : vector<224x168xf32> to vector<14x2x8x168xf32>
    %17 = vector.extract_strided_slice %16 {offsets = [0, 0, 0, 0], sizes = [14, 1, 8, 168], strides = [1, 1, 1, 1]} : vector<14x2x8x168xf32> to vector<14x1x8x168xf32>
    %18 = vector.shape_cast %17 : vector<14x1x8x168xf32> to vector<14x8x168xf32>
    %19 = vector.extract_strided_slice %16 {offsets = [0, 1, 0, 0], sizes = [14, 1, 8, 168], strides = [1, 1, 1, 1]} : vector<14x2x8x168xf32> to vector<14x1x8x168xf32>
    %20 = vector.shape_cast %19 : vector<14x1x8x168xf32> to vector<14x8x168xf32>
    %21 = arith.maximumf %18, %20 : vector<14x8x168xf32>
    %22 = vector.shape_cast %21 : vector<14x8x168xf32> to vector<112x168xf32>
    %c0_7 = arith.constant 0 : index
    %c0_8 = arith.constant 0 : index
    %23 = vector.load %arg4[%c0_7, %c0_8] : memref<168x168xbf16, #tpu.memory_space<vmem>>, vector<168x168xbf16>
    %24 = arith.truncf %22 : vector<112x168xf32> to vector<112x168xbf16>
    %cst_9 = arith.constant dense<0.000000e+00> : vector<112x168xf32>
    %25 = tpu.matmul %24, %23, %cst_9 {dimension_numbers = #tpu.dot_dimension_numbers<[1], [0], [0], [1], [0, 0, 1, 1], [], []>} : vector<112x168xbf16>, vector<168x168xbf16>, vector<112x168xf32> -> vector<112x168xf32>
    %26 = vector.extract_strided_slice %25 {offsets = [0, 0], sizes = [112, 84], strides = [1, 1]} : vector<112x168xf32> to vector<112x84xf32>
    %27 = vector.extract_strided_slice %25 {offsets = [0, 84], sizes = [112, 84], strides = [1, 1]} : vector<112x168xf32> to vector<112x84xf32>
    %28 = arith.maximumf %26, %27 : vector<112x84xf32>
    %29 = vector.shape_cast %28 : vector<112x84xf32> to vector<14x8x84xf32>
    %30 = vector.extract_strided_slice %29 {offsets = [0, 0, 0], sizes = [10, 8, 84], strides = [1, 1, 1]} : vector<14x8x84xf32> to vector<10x8x84xf32>
    %31 = vector.extract_strided_slice %29 {offsets = [1, 0, 0], sizes = [10, 8, 84], strides = [1, 1, 1]} : vector<14x8x84xf32> to vector<10x8x84xf32>
    %32 = vector.extract_strided_slice %29 {offsets = [2, 0, 0], sizes = [10, 8, 84], strides = [1, 1, 1]} : vector<14x8x84xf32> to vector<10x8x84xf32>
    %33 = vector.extract_strided_slice %29 {offsets = [3, 0, 0], sizes = [10, 8, 84], strides = [1, 1, 1]} : vector<14x8x84xf32> to vector<10x8x84xf32>
    %34 = vector.extract_strided_slice %29 {offsets = [4, 0, 0], sizes = [10, 8, 84], strides = [1, 1, 1]} : vector<14x8x84xf32> to vector<10x8x84xf32>
    %35 = tpu.concatenate %30, %31, %32, %33, %34 in 2 : vector<10x8x84xf32>, vector<10x8x84xf32>, vector<10x8x84xf32>, vector<10x8x84xf32>, vector<10x8x84xf32> -> vector<10x8x420xf32>
    %36 = vector.shape_cast %35 : vector<10x8x420xf32> to vector<80x420xf32>
    %c0_10 = arith.constant 0 : index
    %c0_11 = arith.constant 0 : index
    %37 = vector.load %arg5[%c0_10, %c0_11] : memref<420x160xbf16, #tpu.memory_space<vmem>>, vector<420x160xbf16>
    %38 = arith.truncf %36 : vector<80x420xf32> to vector<80x420xbf16>
    %cst_12 = arith.constant dense<0.000000e+00> : vector<80x160xf32>
    %39 = tpu.matmul %38, %37, %cst_12 {dimension_numbers = #tpu.dot_dimension_numbers<[1], [0], [0], [1], [0, 0, 1, 1], [], []>} : vector<80x420xbf16>, vector<420x160xbf16>, vector<80x160xf32> -> vector<80x160xf32>
    %c0_13 = arith.constant 0 : index
    %c0_14 = arith.constant 0 : index
    %40 = vector.load %arg6[%c0_13, %c0_14] : memref<1x160xf32, #tpu.memory_space<vmem>>, vector<1x160xf32>
    %41 = vector.broadcast %40 : vector<1x160xf32> to vector<80x160xf32>
    %42 = arith.addf %39, %41 : vector<80x160xf32>
    %cst_15 = arith.constant 0.000000e+00 : f32
    %43 = vector.broadcast %cst_15 : f32 to vector<80x160xf32>
    %44 = arith.maximumf %42, %43 : vector<80x160xf32>
    %45 = vector.shape_cast %44 : vector<80x160xf32> to vector<5x2x8x160xf32>
    %46 = vector.extract_strided_slice %45 {offsets = [0, 0, 0, 0], sizes = [5, 1, 8, 160], strides = [1, 1, 1, 1]} : vector<5x2x8x160xf32> to vector<5x1x8x160xf32>
    %47 = vector.shape_cast %46 : vector<5x1x8x160xf32> to vector<5x8x160xf32>
    %48 = vector.extract_strided_slice %45 {offsets = [0, 1, 0, 0], sizes = [5, 1, 8, 160], strides = [1, 1, 1, 1]} : vector<5x2x8x160xf32> to vector<5x1x8x160xf32>
    %49 = vector.shape_cast %48 : vector<5x1x8x160xf32> to vector<5x8x160xf32>
    %50 = arith.maximumf %47, %49 : vector<5x8x160xf32>
    %51 = vector.shape_cast %50 : vector<5x8x160xf32> to vector<40x160xf32>
    %c0_16 = arith.constant 0 : index
    %c0_17 = arith.constant 0 : index
    %52 = vector.load %arg7[%c0_16, %c0_17] : memref<160x160xbf16, #tpu.memory_space<vmem>>, vector<160x160xbf16>
    %53 = arith.truncf %51 : vector<40x160xf32> to vector<40x160xbf16>
    %cst_18 = arith.constant dense<0.000000e+00> : vector<40x160xf32>
    %54 = tpu.matmul %53, %52, %cst_18 {dimension_numbers = #tpu.dot_dimension_numbers<[1], [0], [0], [1], [0, 0, 1, 1], [], []>} : vector<40x160xbf16>, vector<160x160xbf16>, vector<40x160xf32> -> vector<40x160xf32>
    %55 = vector.extract_strided_slice %54 {offsets = [0, 0], sizes = [40, 80], strides = [1, 1]} : vector<40x160xf32> to vector<40x80xf32>
    %56 = vector.extract_strided_slice %54 {offsets = [0, 80], sizes = [40, 80], strides = [1, 1]} : vector<40x160xf32> to vector<40x80xf32>
    %57 = arith.maximumf %55, %56 : vector<40x80xf32>
    %58 = vector.shape_cast %57 : vector<40x80xf32> to vector<5x8x80xf32>
    %59 = vector.extract_strided_slice %58 {offsets = [0, 0, 0], sizes = [1, 8, 80], strides = [1, 1, 1]} : vector<5x8x80xf32> to vector<1x8x80xf32>
    %60 = vector.shape_cast %59 : vector<1x8x80xf32> to vector<8x80xf32>
    %61 = vector.extract_strided_slice %58 {offsets = [1, 0, 0], sizes = [1, 8, 80], strides = [1, 1, 1]} : vector<5x8x80xf32> to vector<1x8x80xf32>
    %62 = vector.shape_cast %61 : vector<1x8x80xf32> to vector<8x80xf32>
    %63 = vector.extract_strided_slice %58 {offsets = [2, 0, 0], sizes = [1, 8, 80], strides = [1, 1, 1]} : vector<5x8x80xf32> to vector<1x8x80xf32>
    %64 = vector.shape_cast %63 : vector<1x8x80xf32> to vector<8x80xf32>
    %65 = vector.extract_strided_slice %58 {offsets = [3, 0, 0], sizes = [1, 8, 80], strides = [1, 1, 1]} : vector<5x8x80xf32> to vector<1x8x80xf32>
    %66 = vector.shape_cast %65 : vector<1x8x80xf32> to vector<8x80xf32>
    %67 = vector.extract_strided_slice %58 {offsets = [4, 0, 0], sizes = [1, 8, 80], strides = [1, 1, 1]} : vector<5x8x80xf32> to vector<1x8x80xf32>
    %68 = vector.shape_cast %67 : vector<1x8x80xf32> to vector<8x80xf32>
    %69 = tpu.concatenate %60, %62, %64, %66, %68 in 1 : vector<8x80xf32>, vector<8x80xf32>, vector<8x80xf32>, vector<8x80xf32>, vector<8x80xf32> -> vector<8x400xf32>
    %c0_19 = arith.constant 0 : index
    %c0_20 = arith.constant 0 : index
    %70 = vector.load %arg8[%c0_19, %c0_20] : memref<400x120xbf16, #tpu.memory_space<vmem>>, vector<400x120xbf16>
    %71 = arith.truncf %69 : vector<8x400xf32> to vector<8x400xbf16>
    %cst_21 = arith.constant dense<0.000000e+00> : vector<8x120xf32>
    %72 = tpu.matmul %71, %70, %cst_21 {dimension_numbers = #tpu.dot_dimension_numbers<[1], [0], [0], [1], [0, 0, 1, 1], [], []>} : vector<8x400xbf16>, vector<400x120xbf16>, vector<8x120xf32> -> vector<8x120xf32>
    %c0_22 = arith.constant 0 : index
    %c0_23 = arith.constant 0 : index
    %73 = vector.load %arg9[%c0_22, %c0_23] : memref<1x120xf32, #tpu.memory_space<vmem>>, vector<1x120xf32>
    %74 = vector.broadcast %73 : vector<1x120xf32> to vector<8x120xf32>
    %75 = arith.addf %72, %74 : vector<8x120xf32>
    %cst_24 = arith.constant 0.000000e+00 : f32
    %76 = vector.broadcast %cst_24 : f32 to vector<8x120xf32>
    %77 = arith.maximumf %75, %76 : vector<8x120xf32>
    %c0_25 = arith.constant 0 : index
    %c0_26 = arith.constant 0 : index
    %78 = vector.load %arg10[%c0_25, %c0_26] : memref<120x84xbf16, #tpu.memory_space<vmem>>, vector<120x84xbf16>
    %79 = arith.truncf %77 : vector<8x120xf32> to vector<8x120xbf16>
    %cst_27 = arith.constant dense<0.000000e+00> : vector<8x84xf32>
    %80 = tpu.matmul %79, %78, %cst_27 {dimension_numbers = #tpu.dot_dimension_numbers<[1], [0], [0], [1], [0, 0, 1, 1], [], []>} : vector<8x120xbf16>, vector<120x84xbf16>, vector<8x84xf32> -> vector<8x84xf32>
    %c0_28 = arith.constant 0 : index
    %c0_29 = arith.constant 0 : index
    %81 = vector.load %arg11[%c0_28, %c0_29] : memref<1x84xf32, #tpu.memory_space<vmem>>, vector<1x84xf32>
    %82 = vector.broadcast %81 : vector<1x84xf32> to vector<8x84xf32>
    %83 = arith.addf %80, %82 : vector<8x84xf32>
    %cst_30 = arith.constant 0.000000e+00 : f32
    %84 = vector.broadcast %cst_30 : f32 to vector<8x84xf32>
    %85 = arith.maximumf %83, %84 : vector<8x84xf32>
    %c0_31 = arith.constant 0 : index
    %c0_32 = arith.constant 0 : index
    %86 = vector.load %arg12[%c0_31, %c0_32] : memref<84x3xbf16, #tpu.memory_space<vmem>>, vector<84x3xbf16>
    %87 = arith.truncf %85 : vector<8x84xf32> to vector<8x84xbf16>
    %cst_33 = arith.constant dense<0.000000e+00> : vector<8x3xf32>
    %88 = tpu.matmul %87, %86, %cst_33 {dimension_numbers = #tpu.dot_dimension_numbers<[1], [0], [0], [1], [0, 0, 1, 1], [], []>} : vector<8x84xbf16>, vector<84x3xbf16>, vector<8x3xf32> -> vector<8x3xf32>
    %c0_34 = arith.constant 0 : index
    %c0_35 = arith.constant 0 : index
    %89 = vector.load %arg13[%c0_34, %c0_35] : memref<1x3xf32, #tpu.memory_space<vmem>>, vector<1x3xf32>
    %90 = vector.broadcast %89 : vector<1x3xf32> to vector<8x3xf32>
    %91 = arith.addf %88, %90 : vector<8x3xf32>
    %cst_36 = arith.constant dense<0xFF800000> : vector<8xf32>
    %92 = vector.multi_reduction <maximumf>, %91, %cst_36 [1] : vector<8x3xf32> to vector<8xf32>
    %93 = vector.shape_cast %92 : vector<8xf32> to vector<8x1xf32>
    %94 = vector.broadcast %93 : vector<8x1xf32> to vector<8x3xf32>
    %95 = arith.subf %91, %94 : vector<8x3xf32>
    %96 = math.exp %95 : vector<8x3xf32>
    %cst_37 = arith.constant dense<0.000000e+00> : vector<8xf32>
    %97 = vector.multi_reduction <add>, %96, %cst_37 [1] : vector<8x3xf32> to vector<8xf32>
    %98 = vector.shape_cast %97 : vector<8xf32> to vector<8x1xf32>
    %99 = vector.broadcast %98 : vector<8x1xf32> to vector<8x3xf32>
    %100 = arith.divf %96, %99 : vector<8x3xf32>
    %c0_38 = arith.constant 0 : index
    %c0_39 = arith.constant 0 : index
    %101 = vector.load %arg14[%c0_38, %c0_39] : memref<8x3xf32, #tpu.memory_space<vmem>>, vector<8x3xf32>
    tpu.vector_store %arg14[%c0_38, %c0_39], %100 {strides = array<i32>} : memref<8x3xf32, #tpu.memory_space<vmem>>, vector<8x3xf32>,
    return
  }
  func.func @transform_0(%arg0: i32) -> (i32, i32, i32) {
    %c0_i32 = arith.constant 0 : i32
    %c0_i32_0 = arith.constant 0 : i32
    %c0_i32_1 = arith.constant 0 : i32
    return %c0_i32, %arg0, %c0_i32_0 : i32, i32, i32
  }
  func.func @transform_1(%arg0: i32) -> (i32, i32) {
    %c0_i32 = arith.constant 0 : i32
    %c0_i32_0 = arith.constant 0 : i32
    %c0_i32_1 = arith.constant 0 : i32
    return %c0_i32, %c0_i32_0 : i32, i32
  }
  func.func @transform_2(%arg0: i32) -> (i32, i32) {
    %c0_i32 = arith.constant 0 : i32
    %c0_i32_0 = arith.constant 0 : i32
    %c0_i32_1 = arith.constant 0 : i32
    return %c0_i32, %c0_i32_0 : i32, i32
  }
  func.func @transform_3(%arg0: i32) -> (i32, i32) {
    %c0_i32 = arith.constant 0 : i32
    %c0_i32_0 = arith.constant 0 : i32
    %c0_i32_1 = arith.constant 0 : i32
    return %c0_i32, %c0_i32_0 : i32, i32
  }
  func.func @transform_4(%arg0: i32) -> (i32, i32) {
    %c0_i32 = arith.constant 0 : i32
    %c0_i32_0 = arith.constant 0 : i32
    %c0_i32_1 = arith.constant 0 : i32
    return %c0_i32, %c0_i32_0 : i32, i32
  }
  func.func @transform_5(%arg0: i32) -> (i32, i32) {
    %c0_i32 = arith.constant 0 : i32
    %c0_i32_0 = arith.constant 0 : i32
    %c0_i32_1 = arith.constant 0 : i32
    return %c0_i32, %c0_i32_0 : i32, i32
  }
  func.func @transform_6(%arg0: i32) -> (i32, i32) {
    %c0_i32 = arith.constant 0 : i32
    %c0_i32_0 = arith.constant 0 : i32
    %c0_i32_1 = arith.constant 0 : i32
    return %c0_i32, %c0_i32_0 : i32, i32
  }
  func.func @transform_7(%arg0: i32) -> (i32, i32) {
    %c0_i32 = arith.constant 0 : i32
    %c0_i32_0 = arith.constant 0 : i32
    %c0_i32_1 = arith.constant 0 : i32
    return %c0_i32, %c0_i32_0 : i32, i32
  }
  func.func @transform_8(%arg0: i32) -> (i32, i32) {
    %c0_i32 = arith.constant 0 : i32
    %c0_i32_0 = arith.constant 0 : i32
    %c0_i32_1 = arith.constant 0 : i32
    return %c0_i32, %c0_i32_0 : i32, i32
  }
  func.func @transform_9(%arg0: i32) -> (i32, i32) {
    %c0_i32 = arith.constant 0 : i32
    %c0_i32_0 = arith.constant 0 : i32
    %c0_i32_1 = arith.constant 0 : i32
    return %c0_i32, %c0_i32_0 : i32, i32
  }
  func.func @transform_10(%arg0: i32) -> (i32, i32) {
    %c0_i32 = arith.constant 0 : i32
    %c0_i32_0 = arith.constant 0 : i32
    %c0_i32_1 = arith.constant 0 : i32
    return %c0_i32, %c0_i32_0 : i32, i32
  }
  func.func @transform_11(%arg0: i32) -> (i32, i32) {
    %c0_i32 = arith.constant 0 : i32
    %c0_i32_0 = arith.constant 0 : i32
    %c0_i32_1 = arith.constant 0 : i32
    return %c0_i32, %c0_i32_0 : i32, i32
  }
  func.func @transform_12(%arg0: i32) -> (i32, i32) {
    %c0_i32 = arith.constant 0 : i32
    %c0_i32_0 = arith.constant 0 : i32
    %c0_i32_1 = arith.constant 0 : i32
    return %c0_i32, %c0_i32_0 : i32, i32
  }
  func.func @transform_13(%arg0: i32) -> (i32, i32) {
    %c0_i32 = arith.constant 0 : i32
    %c0_i32_0 = arith.constant 0 : i32
    return %arg0, %c0_i32 : i32, i32
  }
}

</mosaic_0001>

<bundles_post_ra>
// kernel: tpu_custom_call.1
= control target key start
LH: loop header
LB: loop body
LE: loop exit
PB: predicated region body
PF: predicated region fallthrough
CT: control target
= control target key end

     0   :  { %s4453_s18 = smov 96   ;;  %s4454_s23 = smov 64   ;;  %vm359_vm0 = vcmask 785408   ;;  %vm388_vm1 = vcmask 523264   ;;  %vm417_vm2 = vcmask 261120   ;;  %vm1508_vm3 = vcmask 1043456   ;;  %s6361_s0 = inlined_call_operand.vmem [shape: f32[32,8,96], index: 0, kind: input, shape index: {}]   ;;  %s6362_s1 = inlined_call_operand.vmem [shape: bf16[480,168], index: 1, kind: input, shape index: {}]   ;;  %s6363_s3 = inlined_call_operand.vmem [shape: bf16[168,168], index: 3, kind: input, shape index: {}]   ;;  %s6364_s2 = inlined_call_operand.vmem [shape: f32[1,168], index: 2, kind: input, shape index: {}]   ;;  %s6365_s4 = inlined_call_operand.vmem [shape: bf16[420,160], index: 4, kind: input, shape index: {}]   ;;  %s6366_s6 = inlined_call_operand.vmem [shape: bf16[160,160], index: 6, kind: input, shape index: {}]   ;;  %s6367_s5 = inlined_call_operand.vmem [shape: f32[1,160], index: 5, kind: input, shape index: {}]   ;;  %s6368_s7 = inlined_call_operand.vmem [shape: bf16[400,120], index: 7, kind: input, shape index: {}]   ;;  %s6369_s9 = inlined_call_operand.vmem [shape: bf16[120,84], index: 9, kind: input, shape index: {}]   ;;  %s6370_s11 = inlined_call_operand.vmem [shape: bf16[84,3], index: 11, kind: input, shape index: {}]   ;;  %s6371_s8 = inlined_call_operand.vmem [shape: f32[1,120], index: 8, kind: input, shape index: {}]   ;;  %s6372_s10 = inlined_call_operand.vmem [shape: f32[1,84], index: 10, kind: input, shape index: {}]   ;;  %s6373_s12 = inlined_call_operand.vmem [shape: f32[1,3], index: 12, kind: input, shape index: {}]   ;;  %s6374_s13 = inlined_call_operand.vmem [shape: f32[8,3], index: 13, kind: output, shape index: {}]  }
   0x1   :  { %v4539_v0 = vld [vmem:[%s6361_s0 + $0x18] sm:$0xff]  ;;  %v4544_v1 = vld [vmem:[%s6361_s0 + $0x20] sm:$0xff]  ;;  %v4549_v2 = vld [vmem:[%s6361_s0 + $0x8] sm:$0xff]  ;;  %s4455_s20 = smov 32   ;;  %vm1486_vm4 = vcmask 326656   ;;  %vm1702_vm5 = vcmask 359424  }
   0x2   :  { %v4553_v3 = vpack.i.bf16 %v4544_v1, %v4539_v0  ;;  %v4558_v4 = vld [vmem:[%s6361_s0 + $0x10] sm:$0xff]  ;;  %v4563_v5 = vld [vmem:[%s6361_s0 + $0x28] sm:$0xff]  ;;  %v4582_v10 = vld [vmem:[%s6361_s0 + $0x38] sm:$0xff]  ;;  %s4457_s24 = smov 84   ;;  %s4458_s25 = smov 40   ;;  %vm1878_vm6 = vcmask 687104  }
   0x3   :  { %v3751_v6 = vpack.i.bf16 %v4558_v4, %v4549_v2  ;;  %v3766_v7 = vpack.i.bf16 %v4563_v5, %v4544_v1  ;;  %v3756_v8 = vpack.i.bf16 %v4539_v0, %v4558_v4  ;;  %v4577_v9 = vld [vmem:[%s6361_s0 + $0x30] sm:$0xff]  ;;  %v4595_v13 = vld [vmem:[%s6361_s0 + $0x40] sm:$0xff]  ;;  %v4600_v14 = vld [vmem:[%s6361_s0 + $0x48] sm:$0xff]  ;;  %s4459_s29 = smov 124   ;;  %s4460_s15 = smov 80   ;;  %vm1899_vm7 = vcmask 1014784  }
   0x4   :  { %3762 = vrot.lane.b32.xlu1 %v4553_v3, %s4453_s18  ;;  %v3776_v11 = vpack.i.bf16 %v4582_v10, %v4577_v9  ;;  %v4590_v12 = vpack.i.bf16 %v4577_v9, %v4563_v5  ;;  %v4605_v15 = vld [vmem:[%s6361_s0 + $0x50] sm:$0xff]  ;;  %v4156_v16 = vld [vmem:[%s6362_s1 + $0x4] ss:$8 sps:$4 sm:$0xff]   ;;  %v4158_v17 = vld [vmem:[%s6362_s1] ss:$8 sps:$4 sm:$0xff]   ;;  %v3786_v18 = vpack.i.bf16 %v4600_v14, %v4595_v13  ;;  %v4623_v20 = vpack.i.bf16 %v4595_v13, %v4582_v10 }
   0x5   :  { %3752 = vrot.lane.b32.xlu0 %v3751_v6, %s4453_s18  ;;  %v4159_v19 = vld [vmem:[%s6362_s1 + $0x14] ss:$8 sps:$4 sm:$0xff]   ;;  %916 = vmatprep.subr.bf16.mxu0 %v4156_v16  ;;  %v4161_v22 = vld [vmem:[%s6362_s1 + $0x10] ss:$8 sps:$4 sm:$0xff]   ;;  %v4162_v23 = vld [vmem:[%s6362_s1 + $0x24] ss:$8 sps:$4 sm:$0xff]   ;;  %v4648_v26 = vpack.i.bf16 %v4605_v15, %v4600_v14 }
   0x6   :  { %v4628_v21 = vld [vmem:[%s6361_s0 + $0x58] sm:$0xff]  ;;  %917 = vmatpush1.bf16.msra.mxu0 %v4158_v17  ;;  %v4642_v25 = vld [vmem:[%s6361_s0 + $0x60] sm:$0xff]  ;;  %v4653_v27 = vld [vmem:[%s6361_s0 + $0x68] sm:$0xff]  ;;  %vm2287_vm8 = vcmask 1041408   ;;  %vm1910_vm9 = vcmask 654336   ;;  %vm2271_vm10 = vcmask 293888  }
   0x7   :  { %918 = vmatprep.subr.bf16.mxu0 %v4159_v19  ;;  %v3796_v24 = vpack.i.bf16 %v4628_v21, %v4605_v15  ;;  %v4164_v28 = vld [vmem:[%s6362_s1 + $0x20] ss:$8 sps:$4 sm:$0xff]   ;;  %v4165_v29 = vld [vmem:[%s6362_s1 + $0x34] ss:$8 sps:$4 sm:$0xff]   ;;  %v3806_v30 = vpack.i.bf16 %v4653_v27, %v4642_v25  ;;  %v4673_v32 = vpack.i.bf16 %v4642_v25, %v4628_v21  ;;  %v4167_v34 = vld [vmem:[%s6362_s1 + $0x30] ss:$8 sps:$4 sm:$0xff]  }
   0x8   :  { %3767 = vrot.lane.b32.xlu1 %v3766_v7, %s4454_s23  ;;  %v4667_v31 = vld [vmem:[%s6361_s0 + $0x70] sm:$0xff]  ;;  %v4678_v33 = vld [vmem:[%s6361_s0 + $0x78] sm:$0xff]  ;;  %v4168_v35 = vld [vmem:[%s6362_s1 + $0x44] ss:$8 sps:$4 sm:$0xff]   ;;  %vm2716_vm11 = vcmask 392192   ;;  %vm2750_vm12 = vcmask 916480  }
   0x9   :  { %3757 = vrot.lane.b32.xlu0 %v3756_v8, %s4454_s23  ;;  %v3816_v36 = vpack.i.bf16 %v4678_v33, %v4667_v31  ;;  %v4692_v37 = vld [vmem:[%s6361_s0 + $0x80] sm:$0xff]  ;;  %v4698_v38 = vpack.i.bf16 %v4667_v31, %v4653_v27  ;;  %v4703_v39 = vld [vmem:[%s6361_s0 + $0x88] sm:$0xff]  ;;  %v4171_v41 = vld [vmem:[%s6362_s1 + $0x54] ss:$8 sps:$4 sm:$0xff]   ;;  %vm2964_vm13 = vcmask 130048   ;;  %vm4465_vm14 = vmmov 0  }
   0xa   :  { %919 = vmatpush1.bf16.msra.mxu0 %v4161_v22  ;;  %v4170_v40 = vld [vmem:[%s6362_s1 + $0x40] ss:$8 sps:$4 sm:$0xff]   ;;  %v3826_v42 = vpack.i.bf16 %v4703_v39, %v4692_v37  ;;  %v4717_v43 = vld [vmem:[%s6361_s0 + $0xf0] sm:$0xff]  ;;  %v4722_v44 = vld [vmem:[%s6361_s0 + $0xf8] sm:$0xff]  ;;  %v4728_v45 = vpack.i.bf16 %v4692_v37, %v4678_v33  ;;  %vm3117_vm15 = vcmask 982016  }
   0xb   :  { %920 = vmatprep.subr.bf16.mxu0 %v4162_v23  ;;  %v4733_v46 = vld [vmem:[%s6361_s0 + $0x90] sm:$0xff]  ;;  %v4738_v47 = vld [vmem:[%s6361_s0 + $0x98] sm:$0xff]  ;;  %v4174_v50 = vld [vmem:[%s6362_s1 + $0x64] ss:$8 sps:$4 sm:$0xff]  }
   0xc   :  { %3777 = vrot.lane.b32.xlu1 %v3776_v11, %s4454_s23  ;;  %v4173_v49 = vld [vmem:[%s6362_s1 + $0x50] ss:$8 sps:$4 sm:$0xff]   ;;  %v3836_v51 = vpack.i.bf16 %v4738_v47, %v4733_v46  ;;  %v4755_v52 = vpack.i.bf16 %v4733_v46, %v4703_v39  ;;  %v4760_v53 = vld [vmem:[%s6361_s0 + $0xa0] sm:$0xff]  ;;  %v4765_v54 = vld [vmem:[%s6361_s0 + $0xa8] sm:$0xff] }
   0xd   :  { %3772 = vrot.lane.b32.xlu0 %v4590_v12, %s4453_s18  ;;  %v4176_v55 = vld [vmem:[%s6362_s1 + $0x60] ss:$8 sps:$4 sm:$0xff]   ;;  %v4177_v56 = vld [vmem:[%s6362_s1 + $0x74] ss:$8 sps:$4 sm:$0xff]   ;;  %v3846_v57 = vpack.i.bf16 %v4765_v54, %v4760_v53  ;;  %v4785_v59 = vpack.i.bf16 %v4760_v53, %v4738_v47  ;;  %v4179_v61 = vld [vmem:[%s6362_s1 + $0x70] ss:$8 sps:$4 sm:$0xff]  }
   0xe   :  { %921 = vmatpush1.bf16.msra.mxu0 %v4164_v28  ;;  %v4779_v58 = vld [vmem:[%s6361_s0 + $0xb0] sm:$0xff]  ;;  %v4790_v60 = vld [vmem:[%s6361_s0 + $0xb8] sm:$0xff]  ;;  %v4798_v62 = vld [vmem:[%s6361_s0 + $0xc0] sm:$0xff] }
   0xf   :  { %922 = vmatprep.subr.bf16.mxu0 %v4165_v29  ;;  %v4180_v63 = vld [vmem:[%s6362_s1 + $0x84] ss:$8 sps:$4 sm:$0xff]   ;;  %v3856_v6 = vpack.i.bf16 %v4790_v60, %v4779_v58  ;;  %v4182_v8 = vld [vmem:[%s6362_s1 + $0x80] ss:$8 sps:$4 sm:$0xff]   ;;  %v3851_v11 = vpack.i.bf16 %v4779_v58, %v4765_v54  ;;  %v4183_v16 = vld [vmem:[%s6362_s1 + $0x94] ss:$8 sps:$4 sm:$0xff]   ;;  %v3861_v22 = vpack.i.bf16 %v4798_v62, %v4790_v60 }
  0x10   :  { %3787 = vrot.lane.b32.xlu1 %v3786_v18, %s4454_s23  ;;  %v4809_v7 = vld [vmem:[%s6361_s0 + $0xc8] sm:$0xff]  ;;  %v4824_v17 = vld [vmem:[%s6361_s0 + $0xd0] sm:$0xff]  ;;  %v4829_v18 = vld [vmem:[%s6361_s0 + $0xd8] sm:$0xff] }
  0x11   :  { %3782 = vrot.lane.b32.xlu0 %v4623_v20, %s4453_s18  ;;  %v3866_v19 = vpack.i.bf16 %v4809_v7, %v4798_v62  ;;  %v4185_v23 = vld [vmem:[%s6362_s1 + $0x90] ss:$8 sps:$4 sm:$0xff]   ;;  %v3876_v28 = vpack.i.bf16 %v4829_v18, %v4824_v17  ;;  %v3871_v29 = vpack.i.bf16 %v4824_v17, %v4809_v7 }
  0x12   :  { %923 = vmatpush1.bf16.msra.mxu0 %v4167_v34  ;;  %v4857_v34 = vld [vmem:[%s6361_s0 + $0xe8] sm:$0xff] }
  0x13   :  { %924 = vmatprep.subr.bf16.mxu0 %v4168_v35  ;;  %v4188_v35 = vld [vmem:[%s6362_s1 + $0xa0] ss:$8 sps:$4 sm:$0xff]  }
  0x14   :  { %3797 = vrot.lane.b32.xlu1 %v3796_v24, %s4454_s23  ;;  %v4186_v24 = vld [vmem:[%s6362_s1 + $0xa4] ss:$8 sps:$4 sm:$0xff]  }
  0x15   :  { %3792 = vrot.lane.b32.xlu0 %v4648_v26, %s4453_s18 }
  0x16   :  { %925 = vmatpush1.bf16.msra.mxu0 %v4170_v40 }
  0x17   :  { %926 = vmatprep.subr.bf16.mxu0 %v4171_v41 }
  0x18   :  { %3807 = vrot.lane.b32.xlu1 %v3806_v30, %s4454_s23  ;;  %v4852_v30 = vld [vmem:[%s6361_s0 + $0xe0] sm:$0xff] }
  0x19   :  { %3802 = vrot.lane.b32.xlu0 %v4673_v32, %s4453_s18  ;;  %v3886_v40 = vpack.i.bf16 %v4857_v34, %v4852_v30  ;;  %v3881_v41 = vpack.i.bf16 %v4852_v30, %v4829_v18 }
  0x1a   :  { %927 = vmatpush1.bf16.msra.mxu0 %v4173_v49  ;;  %v4192_v49 = vld [vmem:[%s6362_s1 + $0xc4] ss:$8 sps:$4 sm:$0xff]  }
  0x1b   :  { %928 = vmatprep.subr.bf16.mxu0 %v4174_v50  ;;  %v4194_v50 = vld [vmem:[%s6362_s1 + $0xc0] ss:$8 sps:$4 sm:$0xff]  }
  0x1c   :  { %3817 = vrot.lane.b32.xlu1 %v3816_v36, %s4454_s23  ;;  %v4189_v36 = vld [vmem:[%s6362_s1 + $0xb4] ss:$8 sps:$4 sm:$0xff]  }
  0x1d   :  { %3812 = vrot.lane.b32.xlu0 %v4698_v38, %s4453_s18 }
  0x1e   :  { %929 = vmatpush1.bf16.msra.mxu0 %v4176_v55  ;;  %v4197_v55 = vld [vmem:[%s6362_s1 + $0xd0] ss:$8 sps:$4 sm:$0xff]  }
  0x1f   :  { %930 = vmatprep.subr.bf16.mxu0 %v4177_v56  ;;  %v4198_v56 = vld [vmem:[%s6362_s1 + $0xe4] ss:$8 sps:$4 sm:$0xff]  }
  0x20   :  { %3827 = vrot.lane.b32.xlu1 %v3826_v42, %s4454_s23  ;;  %v4191_v42 = vld [vmem:[%s6362_s1 + $0xb0] ss:$8 sps:$4 sm:$0xff]  }
  0x21   :  { %3822 = vrot.lane.b32.xlu0 %v4728_v45, %s4453_s18 }
  0x22   :  { %931 = vmatpush1.bf16.msra.mxu0 %v4179_v61 }
  0x23   :  { %932 = vmatprep.subr.bf16.mxu0 %v4180_v63 }
  0x24   :  { %3837 = vrot.lane.b32.xlu1 %v3836_v51, %s4454_s23  ;;  %v4195_v51 = vld [vmem:[%s6362_s1 + $0xd4] ss:$8 sps:$4 sm:$0xff]  }
  0x25   :  { %3832 = vrot.lane.b32.xlu0 %v4755_v52, %s4453_s18 }
  0x26   :  { %933 = vmatpush1.bf16.msra.mxu0 %v4182_v8 }
  0x27   :  { %934 = vmatprep.subr.bf16.mxu0 %v4183_v16 }
  0x28   :  { %3847 = vrot.lane.b32.xlu1 %v3846_v57, %s4454_s23 }
  0x29   :  { %3842 = vrot.lane.b32.xlu0 %v4785_v59, %s4453_s18 }
  0x2a   :  { %935 = vmatpush1.bf16.msra.mxu0 %v4185_v23 }
  0x2b   :  { %936 = vmatprep.subr.bf16.mxu0 %v4186_v24 }
  0x2c   :  { %3857 = vrot.lane.b32.xlu1 %v3856_v6, %s4454_s23 }
  0x2d   :  { %3852 = vrot.lane.b32.xlu0 %v3851_v11, %s4453_s18 }
  0x2e   :  { %937 = vmatpush1.bf16.msra.mxu0 %v4188_v35 }
  0x2f   :  { %938 = vmatprep.subr.bf16.mxu0 %v4189_v36 }
  0x30   :  { %3867 = vrot.lane.b32.xlu1 %v3866_v19, %s4454_s23 }
  0x31   :  { %3862 = vrot.lane.b32.xlu0 %v3861_v22, %s4453_s18 }
  0x32   :  { %939 = vmatpush1.bf16.msra.mxu0 %v4191_v42  ;;  %v4204_v42 = vld [vmem:[%s6362_s1 + $0x100] ss:$8 sps:$4 sm:$0xff]  }
  0x33   :  { %940 = vmatprep.subr.bf16.mxu0 %v4192_v49 }
  0x34   :  { %3877 = vrot.lane.b32.xlu1 %v3876_v28, %s4454_s23 }
  0x35   :  { %3872 = vrot.lane.b32.xlu0 %v3871_v29, %s4453_s18 }
  0x36   :  { %941 = vmatpush1.bf16.msra.mxu0 %v4194_v50 }
  0x37   :  { %942 = vmatprep.subr.bf16.mxu0 %v4195_v51 }
  0x38   :  { %3887 = vrot.lane.b32.xlu1 %v3886_v40, %s4454_s23 }
  0x39   :  { %3882 = vrot.lane.b32.xlu0 %v3881_v41, %s4453_s18 }
  0x3a   :  { %943 = vmatpush1.bf16.msra.mxu0 %v4197_v55 }
  0x3b   :  { %944 = vmatprep.subr.bf16.mxu0 %v4198_v56 }
  0x3c   :  { %3897 = vrot.lane.b32.xlu1 %v4590_v12, %s4455_s20  ;;  %v4201_v12 = vld [vmem:[%s6362_s1 + $0xf4] ss:$8 sps:$4 sm:$0xff]  }
  0x3d   :  { %3892 = vrot.lane.b32.xlu0 %v4553_v3, %s4455_s20  ;;  %v4200_v3 = vld [vmem:[%s6362_s1 + $0xe0] ss:$8 sps:$4 sm:$0xff]  }
  0x3e   :  { %945 = vmatpush1.bf16.msra.mxu0 %v4200_v3 }
  0x3f   :  { %946 = vmatprep.subr.bf16.mxu0 %v4201_v12  ;;  %v4209_v12 = vld [vmem:[%s6362_s1 + $0x114] ss:$8 sps:$4 sm:$0xff]  }
  0x40   :  { %3907 = vrot.lane.b32.xlu1 %v4648_v26, %s4455_s20  ;;  %v4206_v26 = vld [vmem:[%s6362_s1 + $0x104] ss:$8 sps:$4 sm:$0xff]  }
  0x41   :  { %3902 = vrot.lane.b32.xlu0 %v4623_v20, %s4455_s20  ;;  %v4203_v20 = vld [vmem:[%s6362_s1 + $0xf0] ss:$8 sps:$4 sm:$0xff]  }
  0x42   :  { %947 = vmatpush1.bf16.msra.mxu0 %v4203_v20 }
  0x43   :  { %1089 = vmatprep.subr.bf16.mxu0 %v4206_v26 }
  0x44   :  { %3917 = vrot.lane.b32.xlu1 %v4698_v38, %s4455_s20 }
  0x45   :  { %3912 = vrot.lane.b32.xlu0 %v4673_v32, %s4455_s20  ;;  %v3956_v32 = vpack.i.bf16 %v4717_v43, %v4857_v34 }
  0x48   :  { %3927 = vrot.lane.b32.xlu1 %v4755_v52, %s4455_s20 }
  0x49   :  { %3922 = vrot.lane.b32.xlu0 %v4728_v45, %s4455_s20 }
  0x4c   :  { %3937 = vrot.lane.b32.xlu1 %v3851_v11, %s4455_s20 }
  0x4d   :  { %3932 = vrot.lane.b32.xlu0 %v4785_v59, %s4455_s20  ;;  %v45_v59 = vld [vmem:[%s6361_s0] sm:$0xff] }
  0x50   :  { %3947 = vrot.lane.b32.xlu1 %v3871_v29, %s4455_s20 }
  0x51   :  { %3942 = vrot.lane.b32.xlu0 %v3861_v22, %s4455_s20 }
  0x54   :  { %3957 = vrot.lane.b32.xlu1 %v3956_v32, %s4455_s20  ;;  %v4207_v32 = vld [vmem:[%s6362_s1 + $0x110] ss:$8 sps:$4 sm:$0xff]  }
  0x55   :  { %3952 = vrot.lane.b32.xlu0 %v3881_v41, %s4455_s20 }
  0x76   :  { %v3763_v38 = vpop.permute.xlu1 %3762 }
  0x77   :  { %v3753_v45 = vpop.permute.xlu0 %3752  ;;  %v3765_v61 = vunpack.i.h.bf16 %v3763_v38  ;;  %v3764_v63 = vunpack.i.l.bf16 %v3763_v38 }
  0x78   :  { %v3755_v52 = vunpack.i.h.bf16 %v3753_v45  ;;  %v3754_v57 = vunpack.i.l.bf16 %v3753_v45 }
  0x79   :  { %v362_v38 = vsel %vm359_vm0, %v4558_v4, %v3764_v63  ;;  %v363_v45 = vsel %vm359_vm0, %v4539_v0, %v3765_v61  ;;  %v4210_v0 = vld [vmem:[%s6362_s1 + $0x120] ss:$8 sps:$4 sm:$0xff]  }
  0x7a   :  { %v4931_v6 = vpop.permute.xlu1 %3767  ;;  %v360_v23 = vsel %vm359_vm0, %v45_v59, %v3754_v57  ;;  %v361_v24 = vsel %vm359_vm0, %v4549_v2, %v3755_v52  ;;  %v4212_v59 = vld [vmem:[%s6362_s1 + $0x124] ss:$8 sps:$4 sm:$0xff]   ;;  %v510_v4 = vpack.c.bf16 %v363_v45, %v362_v38  ;;  %v4216_v38 = vld [vmem:[%s6362_s1 + $0x140] ss:$8 sps:$4 sm:$0xff]  }
  0x7b   :  { %v3770_v8 = vunpack.i.h.bf16 %v4931_v6  ;;  %v3769_v11 = vunpack.i.l.bf16 %v4931_v6  ;;  %v4935_v16 = vpop.permute.xlu0 %3757  ;;  %v506_v49 = vpack.c.bf16 %v361_v24, %v360_v23 }
  0x7c   :  { %v3760_v19 = vunpack.i.h.bf16 %v4935_v16  ;;  %v3759_v22 = vunpack.i.l.bf16 %v4935_v16  ;;  %v4243_v16 = vld [vmem:[%s6362_s1 + $0x1d0] ss:$8 sps:$4 sm:$0xff]  }
  0x7d   :  { %v391_v28 = vsel %vm388_vm1, %v3764_v63, %v3769_v11  ;;  %v392_v29 = vsel %vm388_vm1, %v3765_v61, %v3770_v8 }
  0x7e   :  { %v4948_v35 = vpop.permute.xlu1 %3777  ;;  %v389_v36 = vsel %vm388_vm1, %v3754_v57, %v3759_v22  ;;  %v390_v40 = vsel %vm388_vm1, %v3755_v52, %v3760_v19  ;;  %v511_v50 = vpack.c.bf16 %v392_v29, %v391_v28 }
  0x7f   :  { %v3773_v41 = vpop.permute.xlu0 %3772  ;;  %v507_v2 = vpack.c.bf16 %v390_v40, %v389_v36  ;;  %v6382_v51 = vunpack.i.h.bf16 %v4948_v35  ;;  %v6384_v55 = vunpack.i.l.bf16 %v4948_v35  ;;  %v4215_v40 = vld [vmem:[%s6362_s1 + $0x134] ss:$8 sps:$4 sm:$0xff]  }
  0x80   :  { %v3775_v56 = vunpack.i.h.bf16 %v3773_v41  ;;  %v3774_v3 = vunpack.i.l.bf16 %v3773_v41 }
  0x81   :  { %948 = vmatprep.mubr.bf16.mxu0 %v507_v2 }
  0x82   :  { %949 = vmatmul.mubr.bf16.vlgmr.msra.gmra.mrb[0].mxu0 %v506_v49  ;;  %v4964_v20 = vpop.permute.xlu1 %3787  ;;  %v393_v52 = vsel %vm388_vm1, %v3774_v3, %v6384_v55  ;;  %v394_v57 = vsel %vm388_vm1, %v3775_v56, %v6382_v51  ;;  %v365_v49 = vsel %vm359_vm0, %v4563_v5, %v3775_v56 }
  0x83   :  { %1090 = vmatpush1.bf16.msra.mxu0 %v4204_v42  ;;  %v3783_v26 = vpop.permute.xlu0 %3782  ;;  %958 = vmatprep.mubr.bf16.mxu0 %v511_v50  ;;  %v515_v63 = vpack.c.bf16 %v394_v57, %v393_v52  ;;  %v6385_v61 = vunpack.i.h.bf16 %v4964_v20  ;;  %v6386_v28 = vunpack.i.l.bf16 %v4964_v20  ;;  %v364_v42 = vsel %vm359_vm0, %v4544_v1, %v3774_v3  ;;  %v4213_v50 = vld [vmem:[%s6362_s1 + $0x130] ss:$8 sps:$4 sm:$0xff]   ;;  %v4218_v1 = vld [vmem:[%s6362_s1 + $0x144] ss:$8 sps:$4 sm:$0xff]  }
  0x84   :  { %1091 = vmatprep.subr.bf16.mxu0 %v4209_v12  ;;  %v3785_v29 = vunpack.i.h.bf16 %v3783_v26  ;;  %v3784_v36 = vunpack.i.l.bf16 %v3783_v26  ;;  %v514_v5 = vpack.c.bf16 %v365_v49, %v364_v42 }
  0x86   :  { %v4982_v23 = vpop.permute.xlu1 %3797  ;;  %v395_v12 = vsel %vm388_vm1, %v3784_v36, %v6386_v28  ;;  %v396_v26 = vsel %vm388_vm1, %v3785_v29, %v6385_v61  ;;  %v367_v42 = vsel %vm359_vm0, %v4582_v10, %v3785_v29 }
  0x87   :  { %v4984_v24 = vpop.permute.xlu0 %3792  ;;  %1092 = vmatpush1.bf16.msra.mxu0 %v4207_v32  ;;  %v519_v32 = vpack.c.bf16 %v396_v26, %v395_v12  ;;  %v6375_v45 = vunpack.i.h.bf16 %v4982_v23  ;;  %v6378_v52 = vunpack.i.l.bf16 %v4982_v23  ;;  %v4222_v26 = vld [vmem:[%s6362_s1 + $0x160] ss:$8 sps:$4 sm:$0xff]  }
  0x88   :  { %1093 = vmatprep.subr.bf16.mxu0 %v4212_v59  ;;  %v3795_v57 = vunpack.i.h.bf16 %v4984_v24  ;;  %v3794_v59 = vunpack.i.l.bf16 %v4984_v24  ;;  %v4219_v24 = vld [vmem:[%s6362_s1 + $0x150] ss:$8 sps:$4 sm:$0xff]  }
  0x8a   :  { %959 = vmatmul.mubr.bf16.gmra.mrb[4].mxu0 %v510_v4  ;;  %v4994_v41 = vpop.permute.xlu1 %3807  ;;  %v4221_v4 = vld [vmem:[%s6362_s1 + $0x154] ss:$8 sps:$4 sm:$0xff]   ;;  %v397_v49 = vsel %vm388_vm1, %v3794_v59, %v6378_v52 }
  0x8b   :  { %v4996_v2 = vpop.permute.xlu0 %3802  ;;  %968 = vmatprep.mubr.bf16.mxu0 %v515_v63  ;;  %1094 = vmatpush1.bf16.msra.mxu0 %v4210_v0 }
  0x8c   :  { %1095 = vmatprep.subr.bf16.mxu0 %v4215_v40  ;;  %v366_v40 = vsel %vm359_vm0, %v4577_v9, %v3784_v36  ;;  %v4224_v9 = vld [vmem:[%s6362_s1 + $0x164] ss:$8 sps:$4 sm:$0xff]  }
  0x8d   :  { %v518_v10 = vpack.c.bf16 %v367_v42, %v366_v40 }
  0x8e   :  { %v5014_v3 = vpop.permute.xlu1 %3817 }
  0x8f   :  { %v5016_v56 = vpop.permute.xlu0 %3812  ;;  %1096 = vmatpush1.bf16.msra.mxu0 %v4213_v50  ;;  %v398_v50 = vsel %vm388_vm1, %v3795_v57, %v6375_v45  ;;  %v6376_v48 = vunpack.i.l.bf16 %v5014_v3 }
  0x90   :  { %1097 = vmatprep.subr.bf16.mxu0 %v4218_v1  ;;  %v523_v12 = vpack.c.bf16 %v398_v50, %v397_v49  ;;  %v6380_v1 = vunpack.i.h.bf16 %v4994_v41  ;;  %v369_v49 = vsel %vm359_vm0, %v4600_v14, %v3795_v57  ;;  %v3814_v45 = vunpack.i.l.bf16 %v5016_v56 }
  0x92   :  { %969 = vmatmul.mubr.bf16.gmra.mrb[8].mxu0 %v514_v5  ;;  %v5028_v63 = vpop.permute.xlu1 %3827  ;;  %v6381_v5 = vunpack.i.l.bf16 %v4994_v41 }
  0x93   :  { %v5030_v0 = vpop.permute.xlu0 %3822  ;;  %978 = vmatprep.mubr.bf16.mxu0 %v519_v32  ;;  %1098 = vmatpush1.bf16.msra.mxu0 %v4216_v38  ;;  %v3805_v32 = vunpack.i.h.bf16 %v4996_v2  ;;  %v3804_v38 = vunpack.i.l.bf16 %v4996_v2  ;;  %v4225_v2 = vld [vmem:[%s6362_s1 + $0x170] ss:$8 sps:$4 sm:$0xff]  }
  0x94   :  { %1099 = vmatprep.subr.bf16.mxu0 %v4221_v4  ;;  %v4227_v4 = vld [vmem:[%s6362_s1 + $0x174] ss:$8 sps:$4 sm:$0xff]   ;;  %v3824_v52 = vunpack.i.l.bf16 %v5030_v0 }
  0x95   :  { %v399_v50 = vsel %vm388_vm1, %v3804_v38, %v6381_v5 }
  0x96   :  { %v5048_v36 = vpop.permute.xlu1 %3837  ;;  %v374_v28 = vsel %vm359_vm0, %v4667_v31, %v3824_v52 }
  0x97   :  { %v5050_v29 = vpop.permute.xlu0 %3832  ;;  %1100 = vmatpush1.bf16.msra.mxu0 %v4219_v24  ;;  %v368_v24 = vsel %vm359_vm0, %v4595_v13, %v3794_v59  ;;  %v4230_v13 = vld [vmem:[%s6362_s1 + $0x184] ss:$8 sps:$4 sm:$0xff]  }
  0x98   :  { %1101 = vmatprep.subr.bf16.mxu0 %v4224_v9  ;;  %v400_v9 = vsel %vm388_vm1, %v3805_v32, %v6380_v1  ;;  %v522_v14 = vpack.c.bf16 %v369_v49, %v368_v24  ;;  %v4233_v24 = vld [vmem:[%s6362_s1 + $0x194] ss:$8 sps:$4 sm:$0xff]  }
  0x9a   :  { %979 = vmatmul.mubr.bf16.gmra.mrb[12].mxu0 %v518_v10  ;;  %v5062_v40 = vpop.permute.xlu1 %3847  ;;  %v527_v10 = vpack.c.bf16 %v400_v9, %v399_v50  ;;  %v370_v50 = vsel %vm359_vm0, %v4605_v15, %v3804_v38  ;;  %v371_v9 = vsel %vm359_vm0, %v4628_v21, %v3805_v32  ;;  %v4236_v15 = vld [vmem:[%s6362_s1 + $0x1a4] ss:$8 sps:$4 sm:$0xff]  }
  0x9b   :  { %v5064_v42 = vpop.permute.xlu0 %3842  ;;  %988 = vmatprep.mubr.bf16.mxu0 %v523_v12  ;;  %1102 = vmatpush1.bf16.msra.mxu0 %v4222_v26  ;;  %v4228_v12 = vld [vmem:[%s6362_s1 + $0x180] ss:$8 sps:$4 sm:$0xff]   ;;  %v6377_v26 = vunpack.i.h.bf16 %v5014_v3  ;;  %v526_v21 = vpack.c.bf16 %v371_v9, %v370_v50  ;;  %v4239_v50 = vld [vmem:[%s6362_s1 + $0x1b4] ss:$8 sps:$4 sm:$0xff]  }
  0x9c   :  { %1103 = vmatprep.subr.bf16.mxu0 %v4227_v4  ;;  %v3815_v4 = vunpack.i.h.bf16 %v5016_v56  ;;  %v4231_v56 = vld [vmem:[%s6362_s1 + $0x190] ss:$8 sps:$4 sm:$0xff]  }
  0x9e   :  { %v5082_v59 = vpop.permute.xlu1 %3857 }
  0x9f   :  { %v5084_v57 = vpop.permute.xlu0 %3852  ;;  %1104 = vmatpush1.bf16.msra.mxu0 %v4225_v2 }
  0xa0   :  { %1105 = vmatprep.subr.bf16.mxu0 %v4230_v13  ;;  %v401_v13 = vsel %vm388_vm1, %v3814_v45, %v6376_v48  ;;  %v6383_v48 = vunpack.i.h.bf16 %v5028_v63 }
  0xa2   :  { %989 = vmatmul.mubr.bf16.gmra.mrb[16].mxu0 %v522_v14  ;;  %v5096_v49 = vpop.permute.xlu1 %3867  ;;  %v402_v14 = vsel %vm388_vm1, %v3815_v4, %v6377_v26  ;;  %v6379_v26 = vunpack.i.l.bf16 %v5028_v63 }
  0xa3   :  { %v5098_v2 = vpop.permute.xlu0 %3862  ;;  %998 = vmatprep.mubr.bf16.mxu0 %v527_v10  ;;  %1106 = vmatpush1.bf16.msra.mxu0 %v4228_v12  ;;  %v531_v10 = vpack.c.bf16 %v402_v14, %v401_v13  ;;  %v4234_v12 = vld [vmem:[%s6362_s1 + $0x1a0] ss:$8 sps:$4 sm:$0xff]   ;;  %v372_v13 = vsel %vm359_vm0, %v4642_v25, %v3814_v45  ;;  %v373_v14 = vsel %vm359_vm0, %v4653_v27, %v3815_v4  ;;  %v4242_v25 = vld [vmem:[%s6362_s1 + $0x1c4] ss:$8 sps:$4 sm:$0xff]   ;;  %v3839_v27 = vunpack.i.l.bf16 %v5048_v36 }
  0xa4   :  { %1107 = vmatprep.subr.bf16.mxu0 %v4233_v24  ;;  %v3825_v24 = vunpack.i.h.bf16 %v5030_v0  ;;  %v4237_v0 = vld [vmem:[%s6362_s1 + $0x1b0] ss:$8 sps:$4 sm:$0xff]   ;;  %v3834_v45 = vunpack.i.l.bf16 %v5050_v29  ;;  %v3840_v4 = vunpack.i.h.bf16 %v5048_v36  ;;  %v3865_v6 = vunpack.i.h.bf16 %v5098_v2 }
  0xa6   :  { %v5116_v38 = vpop.permute.xlu1 %3877 }
  0xa7   :  { %v5118_v32 = vpop.permute.xlu0 %3872  ;;  %1108 = vmatpush1.bf16.msra.mxu0 %v4231_v56 }
  0xa8   :  { %1109 = vmatprep.subr.bf16.mxu0 %v4236_v15  ;;  %v403_v15 = vsel %vm388_vm1, %v3824_v52, %v6379_v26  ;;  %v530_v26 = vpack.c.bf16 %v373_v14, %v372_v13  ;;  %v375_v13 = vsel %vm359_vm0, %v4678_v33, %v3825_v24  ;;  %v405_v14 = vsel %vm388_vm1, %v3834_v45, %v3839_v27 }
  0xaa   :  { %999 = vmatmul.mubr.bf16.gmra.mrb[20].mxu0 %v526_v21  ;;  %v5130_v9 = vpop.permute.xlu1 %3887  ;;  %v404_v21 = vsel %vm388_vm1, %v3825_v24, %v6383_v48  ;;  %v3849_v24 = vunpack.i.l.bf16 %v5062_v40 }
  0xab   :  { %v5132_v56 = vpop.permute.xlu0 %3882  ;;  %1008 = vmatprep.mubr.bf16.mxu0 %v531_v10  ;;  %1110 = vmatpush1.bf16.msra.mxu0 %v4234_v12  ;;  %v3835_v10 = vunpack.i.h.bf16 %v5050_v29  ;;  %v535_v48 = vpack.c.bf16 %v404_v21, %v403_v15  ;;  %v4245_v29 = vld [vmem:[%s6362_s1 + $0x1d4] ss:$8 sps:$4 sm:$0xff]   ;;  %v6387_v21 = vunpack.i.l.bf16 %v4964_v20 }
  0xac   :  { %1111 = vmatprep.subr.bf16.mxu0 %v4239_v50  ;;  %v4240_v50 = vld [vmem:[%s6362_s1 + $0x1c0] ss:$8 sps:$4 sm:$0xff]  }
  0xae   :  { %v3898_v12 = vpop.permute.xlu1 %3897 }
  0xaf   :  { %v3900_v1 = vunpack.i.h.bf16 %v3898_v12  ;;  %v3899_v5 = vunpack.i.l.bf16 %v3898_v12  ;;  %v3893_v51 = vpop.permute.xlu0 %3892  ;;  %1112 = vmatpush1.bf16.msra.mxu0 %v4237_v0 }
  0xb0   :  { %v3895_v55 = vunpack.i.h.bf16 %v3893_v51  ;;  %v3894_v61 = vunpack.i.l.bf16 %v3893_v51  ;;  %1113 = vmatprep.subr.bf16.mxu0 %v4242_v25 }
  0xb1   :  { %v5170_v0 = vsel %vm417_vm2, %v3769_v11, %v3899_v5  ;;  %v5175_v31 = vsel %vm417_vm2, %v3770_v8, %v3900_v1  ;;  %v406_v11 = vsel %vm388_vm1, %v3835_v10, %v3840_v4 }
  0xb2   :  { %v5180_v51 = vsel %vm417_vm2, %v3759_v22, %v3894_v61  ;;  %v5185_v33 = vsel %vm417_vm2, %v3760_v19, %v3895_v55  ;;  %1009 = vmatmul.mubr.bf16.gmra.mrb[24].mxu0 %v530_v26  ;;  %v3908_v52 = vpop.permute.xlu1 %3907  ;;  %v3850_v19 = vunpack.i.h.bf16 %v5062_v40  ;;  %v534_v26 = vpack.c.bf16 %v375_v13, %v374_v28 }
  0xb3   :  { %v3910_v1 = vunpack.i.h.bf16 %v3908_v52  ;;  %v3909_v22 = vunpack.i.l.bf16 %v3908_v52  ;;  %v3903_v61 = vpop.permute.xlu0 %3902  ;;  %1018 = vmatprep.mubr.bf16.mxu0 %v535_v48  ;;  %1114 = vmatpush1.bf16.msra.mxu0 %v4240_v50  ;;  %v539_v15 = vpack.c.bf16 %v406_v11, %v405_v14  ;;  %v6388_v48 = vunpack.i.h.bf16 %v4964_v20 }
  0xb4   :  { %v3905_v55 = vunpack.i.h.bf16 %v3903_v61  ;;  %v3904_v5 = vunpack.i.l.bf16 %v3903_v61  ;;  %1115 = vmatprep.subr.bf16.mxu0 %v4245_v29  ;;  %v3844_v50 = vunpack.i.l.bf16 %v5064_v42  ;;  %v6389_v61 = vunpack.i.l.bf16 %v4948_v35 }
  0xb5   :  { %v5202_v25 = vsel %vm417_vm2, %v6387_v21, %v3909_v22  ;;  %v5207_v12 = vsel %vm417_vm2, %v6388_v48, %v3910_v1  ;;  %v6390_v29 = vunpack.i.h.bf16 %v4948_v35  ;;  %v3845_v20 = vunpack.i.h.bf16 %v5064_v42 }
  0xb6   :  { %v3918_v52 = vpop.permute.xlu1 %3917  ;;  %v5213_v28 = vsel %vm417_vm2, %v6389_v61, %v3904_v5  ;;  %v376_v35 = vsel %vm359_vm0, %v4692_v37, %v3834_v45  ;;  %v6391_v61 = vunpack.i.l.bf16 %v4994_v41  ;;  %v6392_v42 = vunpack.i.h.bf16 %v4994_v41 }
  0xb7   :  { %v5218_v13 = vsel %vm417_vm2, %v6390_v29, %v3905_v55  ;;  %v3920_v11 = vunpack.i.h.bf16 %v3918_v52  ;;  %v3919_v1 = vunpack.i.l.bf16 %v3918_v52  ;;  %v3913_v22 = vpop.permute.xlu0 %3912  ;;  %1116 = vmatpush1.bf16.msra.mxu0 %v4243_v16  ;;  %v377_v55 = vsel %vm359_vm0, %v4703_v39, %v3835_v10 }
  0xb8   :  { %v3915_v48 = vunpack.i.h.bf16 %v3913_v22  ;;  %v3914_v5 = vunpack.i.l.bf16 %v3913_v22  ;;  %v407_v22 = vsel %vm388_vm1, %v3844_v50, %v3849_v24  ;;  %v6393_v14 = vunpack.i.l.bf16 %v4982_v23 }
  0xb9   :  { %v5232_v29 = vsel %vm417_vm2, %v6391_v61, %v3919_v1  ;;  %v5237_v16 = vsel %vm417_vm2, %v6392_v42, %v3920_v11  ;;  %v6394_v39 = vunpack.i.h.bf16 %v4982_v23  ;;  %v538_v23 = vpack.c.bf16 %v377_v55, %v376_v35 }
  0xba   :  { %1019 = vmatmul.mubr.bf16.gmra.mrb[28].mxu0 %v534_v26  ;;  %v3928_v52 = vpop.permute.xlu1 %3927  ;;  %v5243_v37 = vsel %vm417_vm2, %v6393_v14, %v3914_v5  ;;  %v408_v26 = vsel %vm388_vm1, %v3845_v20, %v3850_v19  ;;  %v3859_v42 = vunpack.i.l.bf16 %v5082_v59  ;;  %v6396_v41 = vunpack.i.h.bf16 %v5028_v63 }
  0xbb   :  { %v5248_v45 = vsel %vm417_vm2, %v6394_v39, %v3915_v48  ;;  %v3930_v10 = vunpack.i.h.bf16 %v3928_v52  ;;  %v3929_v11 = vunpack.i.l.bf16 %v3928_v52  ;;  %v3923_v1 = vpop.permute.xlu0 %3922  ;;  %1028 = vmatprep.mubr.bf16.mxu0 %v539_v15  ;;  %v378_v48 = vsel %vm359_vm0, %v4733_v46, %v3844_v50 }
  0xbc   :  { %v3925_v5 = vunpack.i.h.bf16 %v3923_v1  ;;  %v3924_v61 = vunpack.i.l.bf16 %v3923_v1  ;;  %v379_v52 = vsel %vm359_vm0, %v4738_v47, %v3845_v20  ;;  %v6395_v15 = vunpack.i.l.bf16 %v5028_v63 }
  0xbd   :  { %v5270_v14 = vsel %vm417_vm2, %v6396_v41, %v3930_v10  ;;  %v543_v35 = vpack.c.bf16 %v408_v26, %v407_v22  ;;  %v6397_v55 = vunpack.i.l.bf16 %v5014_v3  ;;  %v6398_v50 = vunpack.i.h.bf16 %v5014_v3 }
  0xbe   :  { %v5265_v39 = vsel %vm417_vm2, %v6395_v15, %v3929_v11  ;;  %v3938_v1 = vpop.permute.xlu1 %3937  ;;  %v3854_v63 = vunpack.i.l.bf16 %v5084_v57  ;;  %v3860_v26 = vunpack.i.h.bf16 %v5082_v59  ;;  %v542_v20 = vpack.c.bf16 %v379_v52, %v378_v48 }
  0xbf   :  { %v5275_v46 = vsel %vm417_vm2, %v6397_v55, %v3924_v61  ;;  %v5280_v47 = vsel %vm417_vm2, %v6398_v50, %v3925_v5  ;;  %v3933_v11 = vpop.permute.xlu0 %3932  ;;  %v3940_v41 = vunpack.i.h.bf16 %v3938_v1  ;;  %v3939_v10 = vunpack.i.l.bf16 %v3938_v1 }
  0xc0   :  { %v3855_v61 = vunpack.i.h.bf16 %v5084_v57  ;;  %v3935_v15 = vunpack.i.h.bf16 %v3933_v11  ;;  %v3934_v3 = vunpack.i.l.bf16 %v3933_v11  ;;  %v3870_v5 = vunpack.i.h.bf16 %v5096_v49 }
  0xc1   :  { %v3869_v55 = vunpack.i.l.bf16 %v5096_v49  ;;  %v5292_v50 = vsel %vm417_vm2, %v3849_v24, %v3939_v10  ;;  %v5297_v1 = vsel %vm417_vm2, %v3850_v19, %v3940_v41  ;;  %v409_v19 = vsel %vm388_vm1, %v3854_v63, %v3859_v42 }
  0xc2   :  { %1029 = vmatmul.mubr.bf16.gmra.mrb[32].mxu0 %v538_v23  ;;  %v3948_v22 = vpop.permute.xlu1 %3947  ;;  %v5302_v59 = vsel %vm417_vm2, %v3839_v27, %v3934_v3  ;;  %v5307_v57 = vsel %vm417_vm2, %v3840_v4, %v3935_v15  ;;  %v3880_v27 = vunpack.i.h.bf16 %v5116_v38  ;;  %v410_v36 = vsel %vm388_vm1, %v3855_v61, %v3860_v26 }
  0xc3   :  { %1038 = vmatprep.mubr.bf16.mxu0 %v543_v35  ;;  %v3943_v40 = vpop.permute.xlu0 %3942  ;;  %v3950_v24 = vunpack.i.h.bf16 %v3948_v22  ;;  %v3949_v23 = vunpack.i.l.bf16 %v3948_v22  ;;  %v3890_v4 = vunpack.i.h.bf16 %v5130_v9  ;;  %v3889_v41 = vunpack.i.l.bf16 %v5130_v9 }
  0xc4   :  { %v3945_v52 = vunpack.i.h.bf16 %v3943_v40  ;;  %v3944_v11 = vunpack.i.l.bf16 %v3943_v40  ;;  %v3879_v22 = vunpack.i.l.bf16 %v5116_v38  ;;  %v547_v48 = vpack.c.bf16 %v410_v36, %v409_v19 }
  0xc5   :  { %v5319_v35 = vsel %vm417_vm2, %v3869_v55, %v3949_v23  ;;  %v5322_v10 = vsel %vm417_vm2, %v3870_v5, %v3950_v24  ;;  %v3864_v38 = vunpack.i.l.bf16 %v5098_v2  ;;  %v380_v2 = vsel %vm359_vm0, %v4760_v53, %v3854_v63 }
  0xc6   :  { %v3958_v15 = vpop.permute.xlu1 %3957  ;;  %v5326_v3 = vsel %vm417_vm2, %v3859_v42, %v3944_v11  ;;  %v5329_v40 = vsel %vm417_vm2, %v3860_v26, %v3945_v52  ;;  %v552_v49 = vpack.c.bf16 %v5322_v10, %v5319_v35  ;;  %v3874_v36 = vunpack.i.l.bf16 %v5118_v32  ;;  %v1366_v10 = vld [vmem:[%s6363_s3 + $0xa0] sm:$0xff] }
  0xc7   :  { %v3953_v9 = vpop.permute.xlu0 %3952  ;;  %v3960_v21 = vunpack.i.h.bf16 %v3958_v15  ;;  %v3959_v23 = vunpack.i.l.bf16 %v3958_v15  ;;  %v548_v24 = vpack.c.bf16 %v5329_v40, %v5326_v3  ;;  %v381_v15 = vsel %vm359_vm0, %v4765_v54, %v3855_v61  ;;  %v4273_v3 = vld [vmem:[%s6363_s3 + $0x94] ss:$8 sps:$4 sm:$0xff]  }
  0xc8   :  { %v3955_v8 = vunpack.i.h.bf16 %v3953_v9  ;;  %v3954_v42 = vunpack.i.l.bf16 %v3953_v9  ;;  %v412_v9 = vsel %vm388_vm1, %v3865_v6, %v3870_v5  ;;  %v382_v53 = vsel %vm359_vm0, %v4779_v58, %v3864_v38 }
  0xc9   :  { %v5338_v11 = vsel %vm417_vm2, %v3889_v41, %v3959_v23  ;;  %v5341_v26 = vsel %vm417_vm2, %v3890_v4, %v3960_v21  ;;  %v546_v23 = vpack.c.bf16 %v381_v15, %v380_v2  ;;  %v383_v54 = vsel %vm359_vm0, %v4790_v60, %v3865_v6  ;;  %v4246_v60 = vld [vmem:[%s6363_s3 + $0x4] ss:$8 sps:$4 sm:$0xff]  }
  0xca   :  { %1039 = vmatmul.mubr.bf16.gmra.mrb[36].mxu0 %v542_v20  ;;  %v5344_v19 = vsel %vm417_vm2, %v3879_v22, %v3954_v42  ;;  %v5347_v52 = vsel %vm417_vm2, %v3880_v27, %v3955_v8  ;;  %v411_v20 = vsel %vm388_vm1, %v3864_v38, %v3869_v55  ;;  %v3875_v42 = vunpack.i.h.bf16 %v5118_v32  ;;  %1515 = vmatprep.subr.bf16.mxu1 %v4246_v60  ;;  %v4436_v60 = vld [vmem:[%s6361_s0 + $0x48] sm:$0xff] }
  0xcb   :  { %1048 = vmatprep.mubr.bf16.mxu0 %v547_v48  ;;  %v556_v21 = vpack.c.bf16 %v5347_v52, %v5344_v19  ;;  %v551_v8 = vpack.c.bf16 %v412_v9, %v411_v20  ;;  %v413_v63 = vsel %vm388_vm1, %v3874_v36, %v3879_v22  ;;  %v550_v55 = vpack.c.bf16 %v383_v54, %v382_v53  ;;  %v4255_v20 = vld [vmem:[%s6363_s3 + $0x34] ss:$8 sps:$4 sm:$0xff]   ;;  %v4258_v54 = vld [vmem:[%s6363_s3 + $0x44] ss:$8 sps:$4 sm:$0xff]  }
  0xcc   :  { %v414_v61 = vsel %vm388_vm1, %v3875_v42, %v3880_v27  ;;  %v3885_v48 = vunpack.i.h.bf16 %v5132_v56  ;;  %v3884_v2 = vunpack.i.l.bf16 %v5132_v56  ;;  %v384_v32 = vsel %vm359_vm0, %v4798_v62, %v3874_v36  ;;  %v4248_v56 = vld [vmem:[%s6363_s3] ss:$8 sps:$4 sm:$0xff]   ;;  %v4249_v62 = vld [vmem:[%s6363_s3 + $0x14] ss:$8 sps:$4 sm:$0xff]  }
  0xcd   :  { %v555_v5 = vpack.c.bf16 %v414_v61, %v413_v63  ;;  %v385_v58 = vsel %vm359_vm0, %v4809_v7, %v3875_v42  ;;  %1516 = vmatpush1.bf16.msra.mxu1 %v4248_v56  ;;  %v4251_v7 = vld [vmem:[%s6363_s3 + $0x10] ss:$8 sps:$4 sm:$0xff]   ;;  %v4432_v42 = vld [vmem:[%s6361_s0 + $0x28] sm:$0xff]  ;;  %v4261_v61 = vld [vmem:[%s6363_s3 + $0x54] ss:$8 sps:$4 sm:$0xff]   ;;  %v6409_v35 = vpack.c.bf16 %v4722_v44, %v4717_v43  ;;  %v3375_v40 = vcombine.high %v1366_v10, %v1366_v10 }
  0xce   :  { %v415_v6 = vsel %vm388_vm1, %v3884_v2, %v3889_v41  ;;  %v416_v27 = vsel %vm388_vm1, %v3885_v48, %v3890_v4  ;;  %v554_v22 = vpack.c.bf16 %v385_v58, %v384_v32  ;;  %1517 = vmatprep.subr.bf16.mxu1 %v4249_v62  ;;  %v4252_v4 = vld [vmem:[%s6363_s3 + $0x24] ss:$8 sps:$4 sm:$0xff]   ;;  %v4254_v41 = vld [vmem:[%s6363_s3 + $0x20] ss:$8 sps:$4 sm:$0xff]   ;;  %v386_v36 = vsel %vm359_vm0, %v4824_v17, %v3884_v2 }
  0xcf   :  { %v559_v38 = vpack.c.bf16 %v416_v27, %v415_v6  ;;  %v387_v15 = vsel %vm359_vm0, %v4829_v18, %v3885_v48  ;;  %v4260_v63 = vld [vmem:[%s6363_s3 + $0x40] ss:$8 sps:$4 sm:$0xff]   ;;  %v4434_v48 = vld [vmem:[%s6361_s0 + $0x38] sm:$0xff]  ;;  %v6399_v32 = vpack.c.bf16 %v5185_v33, %v5180_v51  ;;  %v6400_v27 = vpack.c.bf16 %v5175_v31, %v5170_v0  ;;  %v4437_v51 = vld [vmem:[%s6361_s0 + $0x50] sm:$0xff] }
  0xd0   :  { %v558_v9 = vpack.c.bf16 %v387_v15, %v386_v36  ;;  %v4435_v58 = vld [vmem:[%s6361_s0 + $0x40] sm:$0xff]  ;;  %v4438_v33 = vld [vmem:[%s6361_s0 + $0x58] sm:$0xff]  ;;  %v6401_v62 = vpack.c.bf16 %v5218_v13, %v5213_v28  ;;  %v4440_v31 = vld [vmem:[%s6361_s0 + $0x68] sm:$0xff]  ;;  %v6404_v36 = vpack.c.bf16 %v5237_v16, %v5232_v29  ;;  %v6410_v19 = vpack.c.bf16 %v5341_v26, %v5338_v11 }
  0xd1   :  { %1518 = vmatpush1.bf16.msra.mxu1 %v4251_v7  ;;  %v517_v6 = vpack.c.bf16 %v4436_v60, %v4435_v58  ;;  %v521_v56 = vpack.c.bf16 %v4438_v33, %v4437_v51  ;;  %v4439_v0 = vld [vmem:[%s6361_s0 + $0x60] sm:$0xff]  ;;  %v6402_v7 = vpack.c.bf16 %v5207_v12, %v5202_v25  ;;  %v4441_v28 = vld [vmem:[%s6361_s0 + $0x70] sm:$0xff]  ;;  %v4442_v13 = vld [vmem:[%s6361_s0 + $0x78] sm:$0xff]  ;;  %v564_v43 = vlaneseq }
  0xd2   :  { %1049 = vmatmul.mubr.bf16.gmra.mrb[40].mxu0 %v546_v23  ;;  %1519 = vmatprep.subr.bf16.mxu1 %v4252_v4  ;;  %v4257_v23 = vld [vmem:[%s6363_s3 + $0x30] ss:$8 sps:$4 sm:$0xff]   ;;  %v6403_v4 = vpack.c.bf16 %v5248_v45, %v5243_v37  ;;  %v4443_v25 = vld [vmem:[%s6361_s0 + $0x80] sm:$0xff]  ;;  %v4444_v12 = vld [vmem:[%s6361_s0 + $0x88] sm:$0xff] }
  0xd3   :  { %1058 = vmatprep.mubr.bf16.mxu0 %v551_v8  ;;  %v4431_v8 = vld [vmem:[%s6361_s0 + $0x20] sm:$0xff]  ;;  %v4445_v37 = vld [vmem:[%s6361_s0 + $0x90] sm:$0xff]  ;;  %v4446_v45 = vld [vmem:[%s6361_s0 + $0x98] sm:$0xff]  ;;  %v5573_v44 = vshrl.u32 %v564_v43, 7 }
  0xd4   :  { %v509_v53 = vpack.c.bf16 %v4432_v42, %v4431_v8  ;;  %v537_v15 = vpack.c.bf16 %v4446_v45, %v4445_v37  ;;  %v4447_v29 = vld [vmem:[%s6361_s0 + $0xa0] sm:$0xff]  ;;  %v4448_v16 = vld [vmem:[%s6361_s0 + $0xa8] sm:$0xff]  ;;  %v6407_v42 = vpack.c.bf16 %v5307_v57, %v5302_v59  ;;  %v553_v59 = vpack.c.bf16 %v4829_v18, %v4824_v17  ;;  %v4267_v17 = vld [vmem:[%s6363_s3 + $0x74] ss:$8 sps:$4 sm:$0xff]  }
  0xd5   :  { %1520 = vmatpush1.bf16.msra.mxu1 %v4254_v41  ;;  %v533_v41 = vpack.c.bf16 %v4444_v12, %v4443_v25  ;;  %v4264_v57 = vld [vmem:[%s6363_s3 + $0x64] ss:$8 sps:$4 sm:$0xff]   ;;  %v4269_v18 = vld [vmem:[%s6363_s3 + $0x70] ss:$8 sps:$4 sm:$0xff]   ;;  %v566_v52 = vsub.s32 0, %v5573_v44 }
  0xd6   :  { %1521 = vmatprep.subr.bf16.mxu1 %v4255_v20  ;;  %v6405_v20 = vpack.c.bf16 %v5280_v47, %v5275_v46  ;;  %v4449_v46 = vld [vmem:[%s6361_s0 + $0xb0] sm:$0xff]  ;;  %v4450_v47 = vld [vmem:[%s6361_s0 + $0xb8] sm:$0xff] }
  0xd7   :  { %v545_v8 = vpack.c.bf16 %v4450_v47, %v4449_v46 }
  0xd9   :  { %1522 = vmatpush1.bf16.msra.mxu1 %v4257_v23  ;;  %v6406_v23 = vpack.c.bf16 %v5270_v14, %v5265_v39  ;;  %v4451_v14 = vld [vmem:[%s6361_s0 + $0xc0] sm:$0xff]  ;;  %v4452_v39 = vld [vmem:[%s6361_s0 + $0xc8] sm:$0xff] }
  0xda   :  { %1059 = vmatmul.mubr.bf16.gmra.mrb[44].mxu0 %v550_v55  ;;  %1523 = vmatprep.subr.bf16.mxu1 %v4258_v54  ;;  %v4263_v55 = vld [vmem:[%s6363_s3 + $0x50] ss:$8 sps:$4 sm:$0xff]   ;;  %v6408_v54 = vpack.c.bf16 %v5297_v1, %v5292_v50  ;;  %v4266_v50 = vld [vmem:[%s6363_s3 + $0x60] ss:$8 sps:$4 sm:$0xff]   ;;  %v557_v1 = vpack.c.bf16 %v4857_v34, %v4852_v30  ;;  %v4270_v30 = vld [vmem:[%s6363_s3 + $0x84] ss:$8 sps:$4 sm:$0xff]  }
  0xdb   :  { %1068 = vmatprep.mubr.bf16.mxu0 %v555_v5  ;;  %v4433_v5 = vld [vmem:[%s6361_s0 + $0x30] sm:$0xff]  ;;  %v4272_v34 = vld [vmem:[%s6363_s3 + $0x80] ss:$8 sps:$4 sm:$0xff]  }
  0xdc   :  { %v513_v2 = vpack.c.bf16 %v4434_v48, %v4433_v5 }
  0xdd   :  { %1524 = vmatpush1.bf16.msra.mxu1 %v4260_v63 }
  0xde   :  { %1525 = vmatprep.subr.bf16.mxu1 %v4261_v61  ;;  %v570_v61 = vsub.s32 1, %v5573_v44 }
  0xe1   :  { %1526 = vmatpush1.bf16.msra.mxu1 %v4263_v55 }
  0xe2   :  { %1069 = vmatmul.mubr.bf16.gmra.mrb[48].mxu0 %v554_v22  ;;  %v525_v22 = vpack.c.bf16 %v4440_v31, %v4439_v0  ;;  %1527 = vmatprep.subr.bf16.mxu1 %v4264_v57 }
  0xe3   :  { %1078 = vmatprep.mubr.bf16.mxu0 %v559_v38  ;;  %v529_v38 = vpack.c.bf16 %v4442_v13, %v4441_v28 }
  0xe5   :  { %1528 = vmatpush1.bf16.msra.mxu1 %v4266_v50 }
  0xe6   :  { %1529 = vmatprep.subr.bf16.mxu1 %v4267_v17 }
  0xe9   :  { %1530 = vmatpush1.bf16.msra.mxu1 %v4269_v18 }
  0xea   :  { %1079 = vmatmul.mubr.bf16.gmra.mrb[52].mxu0 %v558_v9  ;;  %v541_v9 = vpack.c.bf16 %v4448_v16, %v4447_v29  ;;  %1531 = vmatprep.subr.bf16.mxu1 %v4270_v30 }
  0xeb   :  { %3340 = vmatprep.mubr.msk.bf16.mxu0 %vm359_vm0, %v509_v53  ;;  %v549_v53 = vpack.c.bf16 %v4452_v39, %v4451_v14 }
  0xed   :  { %1532 = vmatpush1.bf16.msra.mxu1 %v4272_v34 }
  0xee   :  { %1533 = vmatprep.subr.bf16.mxu1 %v4273_v3 }
  0xf2   :  { %1122 = vmatmul.mubr.bf16.vlgmr.msra.gmra.mrb[0].mxu0 %v6399_v32 }
  0xf3   :  { %3341 = vmatprep.mubr.msk.bf16.mxu0 %vm359_vm0, %v513_v2 }
  0xfa   :  { %1132 = vmatmul.mubr.bf16.gmra.mrb[4].mxu0 %v6400_v27 }
  0xfb   :  { %3342 = vmatprep.mubr.msk.bf16.mxu0 %vm359_vm0, %v517_v6 }
 0x102   :  { %1142 = vmatmul.mubr.bf16.gmra.mrb[8].mxu0 %v6401_v62 }
 0x103   :  { %3343 = vmatprep.mubr.msk.bf16.mxu0 %vm359_vm0, %v521_v56 }
 0x10a   :  { %1152 = vmatmul.mubr.bf16.gmra.mrb[12].mxu0 %v6402_v7 }
 0x10b   :  { %3344 = vmatprep.mubr.msk.bf16.mxu0 %vm359_vm0, %v525_v22 }
 0x112   :  { %1162 = vmatmul.mubr.bf16.gmra.mrb[16].mxu0 %v6403_v4 }
 0x113   :  { %3345 = vmatprep.mubr.msk.bf16.mxu0 %vm359_vm0, %v529_v38 }
 0x11a   :  { %1172 = vmatmul.mubr.bf16.gmra.mrb[20].mxu0 %v6404_v36 }
 0x11b   :  { %3346 = vmatprep.mubr.msk.bf16.mxu0 %vm359_vm0, %v533_v41 }
 0x122   :  { %1182 = vmatmul.mubr.bf16.gmra.mrb[24].mxu0 %v6405_v20 }
 0x123   :  { %3347 = vmatprep.mubr.msk.bf16.mxu0 %vm359_vm0, %v537_v15 }
 0x12a   :  { %1192 = vmatmul.mubr.bf16.gmra.mrb[28].mxu0 %v6406_v23 }
 0x12b   :  { %3348 = vmatprep.mubr.msk.bf16.mxu0 %vm359_vm0, %v541_v9 }
 0x132   :  { %1202 = vmatmul.mubr.bf16.gmra.mrb[32].mxu0 %v6407_v42 }
 0x133   :  { %3349 = vmatprep.mubr.msk.bf16.mxu0 %vm359_vm0, %v545_v8 }
 0x13a   :  { %1212 = vmatmul.mubr.bf16.gmra.mrb[36].mxu0 %v6408_v54 }
 0x13b   :  { %3350 = vmatprep.mubr.msk.bf16.mxu0 %vm359_vm0, %v549_v53 }
 0x142   :  { %1222 = vmatmul.mubr.bf16.gmra.mrb[40].mxu0 %v548_v24  ;;  %v3374_v24 = vcombine.low %v1366_v10, %v1366_v10 }
 0x143   :  { %3351 = vmatprep.mubr.msk.bf16.mxu0 %vm359_vm0, %v553_v59 }
 0x144   :  { %v1510_v63 = vsel %vm1508_vm3, %v3374_v24, 0 }
 0x14a   :  { %1232 = vmatmul.mubr.bf16.gmra.mrb[44].mxu0 %v552_v49  ;;  %v4275_v49 = vld [vmem:[%s6363_s3 + $0x90] ss:$8 sps:$4 sm:$0xff]  }
 0x14b   :  { %3352 = vmatprep.mubr.msk.bf16.mxu0 %vm359_vm0, %v557_v1  ;;  %1534 = vmatpush1.bf16.msra.mxu1 %v4275_v49 }
 0x14c   :  { %3376 = vmatprep.subr.msk.bf16.mxu1 %vm1508_vm3, %v3375_v40 }
 0x14f   :  { %1536 = vmatpush1.bf16.msra.mxu1 %v1510_v63 }
 0x152   :  { %1242 = vmatmul.mubr.bf16.gmra.mrb[48].mxu0 %v556_v21  ;;  %v562_v21 = vld [vmem:[%s6364_s2] sm:$0x3]  ;;  %s4456_s2 = smov 44  }
 0x153   :  { %3353 = vmatprep.mubr.msk.bf16.mxu0 %vm359_vm0, %v6409_v35  ;;  %v5582_v55 = vrot.slane %v562_v21, %v566_v52  ;;  %v5586_v5 = vrot.slane %v562_v21, %v570_v61  ;;  %vm3263_vm0 = vcmask 23552  }
 0x15a   :  { %1252 = vmatmul.mubr.bf16.gmra.mrb[52].mxu0 %v6410_v19 }
 0x1c5   :  { %v1123_v11 = vpop.f32.mrb[0].mxu0 }
 0x1c6   :  { %v3586_v26 = vadd.f32 %v1123_v11, %v5582_v55  ;;  %v1125_v48 = vpop.f32.mrb[1].mxu0 }
 0x1c7   :  { %v3587_v2 = vadd.f32 %v1125_v48, %v5586_v5  ;;  %v1127_v32 = vpop.f32.mrb[2].mxu0 }
 0x1c8   :  { %v3588_v58 = vadd.f32 %v1127_v32, %v5582_v55  ;;  %v1129_v60 = vpop.f32.mrb[3].mxu0  ;;  %v1262_v27 = vmax.f32 %v3586_v26, 0.0 }
 0x1c9   :  { %v3589_v6 = vadd.f32 %v1129_v60, %v5586_v5  ;;  %v1263_v33 = vmax.f32 %v3587_v2, 0.0 }
 0x1ca   :  { %v1264_v51 = vmax.f32 %v3588_v58, 0.0 }
 0x1cb   :  { %v1265_v56 = vmax.f32 %v3589_v6, 0.0 }
 0x1cc   :  { %v1318_v62 = vmax.f32 %v1262_v27, %v1264_v51 }
 0x1cd   :  { %v1319_v0 = vmax.f32 %v1263_v33, %v1265_v56  ;;  %v1133_v31 = vpop.f32.mrb[4].mxu0 }
 0x1ce   :  { %v3590_v22 = vadd.f32 %v1133_v31, %v5582_v55  ;;  %v1135_v7 = vpop.f32.mrb[5].mxu0 }
 0x1cf   :  { %v3591_v28 = vadd.f32 %v1135_v7, %v5586_v5  ;;  %v1137_v13 = vpop.f32.mrb[6].mxu0 }
 0x1d0   :  { %v3592_v38 = vadd.f32 %v1137_v13, %v5582_v55  ;;  %v1139_v4 = vpop.f32.mrb[7].mxu0  ;;  %v1266_v12 = vmax.f32 %v3590_v22, 0.0 }
 0x1d1   :  { %v3593_v25 = vadd.f32 %v1139_v4, %v5586_v5  ;;  %v1267_v36 = vmax.f32 %v3591_v28, 0.0 }
 0x1d2   :  { %v1268_v41 = vmax.f32 %v3592_v38, 0.0 }
 0x1d3   :  { %v1269_v37 = vmax.f32 %v3593_v25, 0.0 }
 0x1d4   :  { %v1320_v45 = vmax.f32 %v1266_v12, %v1268_v41 }
 0x1d5   :  { %v1321_v15 = vmax.f32 %v1267_v36, %v1269_v37  ;;  %v1143_v20 = vpop.f32.mrb[8].mxu0 }
 0x1d6   :  { %v3594_v29 = vadd.f32 %v1143_v20, %v5582_v55  ;;  %v1145_v16 = vpop.f32.mrb[9].mxu0  ;;  %v1367_v9 = vpack.c.bf16 %v1320_v45, %v1318_v62 }
 0x1d7   :  { %v3595_v23 = vadd.f32 %v1145_v16, %v5586_v5  ;;  %v1147_v46 = vpop.f32.mrb[10].mxu0  ;;  %v1368_v47 = vpack.c.bf16 %v1321_v15, %v1319_v0 }
 0x1d8   :  { %v3596_v8 = vadd.f32 %v1147_v46, %v5582_v55  ;;  %v1149_v42 = vpop.f32.mrb[11].mxu0  ;;  %v1270_v39 = vmax.f32 %v3594_v29, 0.0 }
 0x1d9   :  { %v3597_v14 = vadd.f32 %v1149_v42, %v5586_v5  ;;  %3377 = vmatprep.mubr.msk.bf16.mxu1 %vm1486_vm4, %v1368_v47  ;;  %v1271_v54 = vmax.f32 %v3595_v23, 0.0 }
 0x1da   :  { %v1272_v53 = vmax.f32 %v3596_v8, 0.0  ;;  %1548 = vmatmul.mubr.bf16.vlgmr.msra.gmra.mrb[0].mxu1 %v1367_v9 }
 0x1db   :  { %v1273_v59 = vmax.f32 %v3597_v14, 0.0 }
 0x1dc   :  { %v1322_v57 = vmax.f32 %v1270_v39, %v1272_v53 }
 0x1dd   :  { %v1323_v50 = vmax.f32 %v1271_v54, %v1273_v59  ;;  %v1153_v1 = vpop.f32.mrb[12].mxu0 }
 0x1de   :  { %v3598_v17 = vadd.f32 %v1153_v1, %v5582_v55  ;;  %v1155_v18 = vpop.f32.mrb[13].mxu0 }
 0x1df   :  { %v3599_v30 = vadd.f32 %v1155_v18, %v5586_v5  ;;  %v1157_v34 = vpop.f32.mrb[14].mxu0 }
 0x1e0   :  { %v3600_v3 = vadd.f32 %v1157_v34, %v5582_v55  ;;  %v1159_v49 = vpop.f32.mrb[15].mxu0  ;;  %v1274_v10 = vmax.f32 %v3598_v17, 0.0 }
 0x1e1   :  { %v3601_v35 = vadd.f32 %v1159_v49, %v5586_v5  ;;  %v1275_v24 = vmax.f32 %v3599_v30, 0.0 }
 0x1e2   :  { %v1276_v40 = vmax.f32 %v3600_v3, 0.0 }
 0x1e3   :  { %v1277_v63 = vmax.f32 %v3601_v35, 0.0 }
 0x1e4   :  { %v1324_v19 = vmax.f32 %v1274_v10, %v1276_v40 }
 0x1e5   :  { %v1325_v43 = vmax.f32 %v1275_v24, %v1277_v63  ;;  %v1163_v21 = vpop.f32.mrb[16].mxu0 }
 0x1e6   :  { %v3602_v11 = vadd.f32 %v1163_v21, %v5582_v55  ;;  %v1165_v26 = vpop.f32.mrb[17].mxu0  ;;  %v1369_v48 = vpack.c.bf16 %v1324_v19, %v1322_v57 }
 0x1e7   :  { %v1370_v2 = vpack.c.bf16 %v1325_v43, %v1323_v50  ;;  %v3603_v32 = vadd.f32 %v1165_v26, %v5586_v5  ;;  %v1167_v58 = vpop.f32.mrb[18].mxu0 }
 0x1e8   :  { %v3604_v60 = vadd.f32 %v1167_v58, %v5582_v55  ;;  %v1169_v6 = vpop.f32.mrb[19].mxu0  ;;  %v1278_v51 = vmax.f32 %v3602_v11, 0.0 }
 0x1e9   :  { %v3605_v27 = vadd.f32 %v1169_v6, %v5586_v5  ;;  %3378 = vmatprep.mubr.msk.bf16.mxu1 %vm1486_vm4, %v1370_v2  ;;  %v1279_v56 = vmax.f32 %v3603_v32, 0.0 }
 0x1ea   :  { %v1280_v33 = vmax.f32 %v3604_v60, 0.0  ;;  %1558 = vmatmul.mubr.bf16.gmra.mrb[4].mxu1 %v1369_v48 }
 0x1eb   :  { %v1281_v62 = vmax.f32 %v3605_v27, 0.0 }
 0x1ec   :  { %v1326_v0 = vmax.f32 %v1278_v51, %v1280_v33 }
 0x1ed   :  { %v1327_v31 = vmax.f32 %v1279_v56, %v1281_v62  ;;  %v1173_v22 = vpop.f32.mrb[20].mxu0 }
 0x1ee   :  { %v3606_v7 = vadd.f32 %v1173_v22, %v5582_v55  ;;  %v1175_v28 = vpop.f32.mrb[21].mxu0 }
 0x1ef   :  { %v3607_v13 = vadd.f32 %v1175_v28, %v5586_v5  ;;  %v1177_v38 = vpop.f32.mrb[22].mxu0 }
 0x1f0   :  { %v3608_v4 = vadd.f32 %v1177_v38, %v5582_v55  ;;  %v1179_v25 = vpop.f32.mrb[23].mxu0  ;;  %v1282_v41 = vmax.f32 %v3606_v7, 0.0 }
 0x1f1   :  { %v3609_v12 = vadd.f32 %v1179_v25, %v5586_v5  ;;  %v1283_v37 = vmax.f32 %v3607_v13, 0.0 }
 0x1f2   :  { %v1284_v36 = vmax.f32 %v3608_v4, 0.0 }
 0x1f3   :  { %v1285_v45 = vmax.f32 %v3609_v12, 0.0 }
 0x1f4   :  { %v1328_v15 = vmax.f32 %v1282_v41, %v1284_v36 }
 0x1f5   :  { %v1329_v20 = vmax.f32 %v1283_v37, %v1285_v45  ;;  %v1183_v29 = vpop.f32.mrb[24].mxu0 }
 0x1f6   :  { %v3610_v16 = vadd.f32 %v1183_v29, %v5582_v55  ;;  %v1185_v9 = vpop.f32.mrb[25].mxu0  ;;  %v1371_v23 = vpack.c.bf16 %v1328_v15, %v1326_v0 }
 0x1f7   :  { %v1372_v46 = vpack.c.bf16 %v1329_v20, %v1327_v31  ;;  %v3611_v47 = vadd.f32 %v1185_v9, %v5586_v5  ;;  %v1187_v8 = vpop.f32.mrb[26].mxu0 }
 0x1f8   :  { %v3612_v42 = vadd.f32 %v1187_v8, %v5582_v55  ;;  %v1189_v14 = vpop.f32.mrb[27].mxu0  ;;  %v1286_v53 = vmax.f32 %v3610_v16, 0.0 }
 0x1f9   :  { %v3613_v39 = vadd.f32 %v1189_v14, %v5586_v5  ;;  %3379 = vmatprep.mubr.msk.bf16.mxu1 %vm1486_vm4, %v1372_v46  ;;  %v1287_v59 = vmax.f32 %v3611_v47, 0.0 }
 0x1fa   :  { %v1288_v54 = vmax.f32 %v3612_v42, 0.0  ;;  %1568 = vmatmul.mubr.bf16.gmra.mrb[8].mxu1 %v1371_v23 }
 0x1fb   :  { %v1289_v57 = vmax.f32 %v3613_v39, 0.0 }
 0x1fc   :  { %v1330_v50 = vmax.f32 %v1286_v53, %v1288_v54 }
 0x1fd   :  { %v1331_v1 = vmax.f32 %v1287_v59, %v1289_v57  ;;  %v1193_v17 = vpop.f32.mrb[28].mxu0 }
 0x1fe   :  { %v3614_v18 = vadd.f32 %v1193_v17, %v5582_v55  ;;  %v1195_v30 = vpop.f32.mrb[29].mxu0 }
 0x1ff   :  { %v3615_v34 = vadd.f32 %v1195_v30, %v5586_v5  ;;  %v1197_v3 = vpop.f32.mrb[30].mxu0 }
 0x200   :  { %v3616_v49 = vadd.f32 %v1197_v3, %v5582_v55  ;;  %v1199_v35 = vpop.f32.mrb[31].mxu0  ;;  %v1290_v40 = vmax.f32 %v3614_v18, 0.0 }
 0x201   :  { %v3617_v10 = vadd.f32 %v1199_v35, %v5586_v5  ;;  %v1291_v63 = vmax.f32 %v3615_v34, 0.0 }
 0x202   :  { %v1292_v24 = vmax.f32 %v3616_v49, 0.0 }
 0x203   :  { %v1293_v19 = vmax.f32 %v3617_v10, 0.0 }
 0x204   :  { %v1332_v43 = vmax.f32 %v1290_v40, %v1292_v24 }
 0x205   :  { %v1333_v21 = vmax.f32 %v1291_v63, %v1293_v19  ;;  %v1203_v11 = vpop.f32.mrb[32].mxu0 }
 0x206   :  { %v3618_v26 = vadd.f32 %v1203_v11, %v5582_v55  ;;  %v1205_v48 = vpop.f32.mrb[33].mxu0  ;;  %v1373_v2 = vpack.c.bf16 %v1332_v43, %v1330_v50 }
 0x207   :  { %v1374_v32 = vpack.c.bf16 %v1333_v21, %v1331_v1  ;;  %v3619_v58 = vadd.f32 %v1205_v48, %v5586_v5  ;;  %v1207_v60 = vpop.f32.mrb[34].mxu0 }
 0x208   :  { %v3620_v6 = vadd.f32 %v1207_v60, %v5582_v55  ;;  %v1209_v27 = vpop.f32.mrb[35].mxu0  ;;  %v1294_v33 = vmax.f32 %v3618_v26, 0.0 }
 0x209   :  { %v3621_v51 = vadd.f32 %v1209_v27, %v5586_v5  ;;  %3380 = vmatprep.mubr.msk.bf16.mxu1 %vm1486_vm4, %v1374_v32  ;;  %v1295_v62 = vmax.f32 %v3619_v58, 0.0 }
 0x20a   :  { %v1296_v56 = vmax.f32 %v3620_v6, 0.0  ;;  %1578 = vmatmul.mubr.bf16.gmra.mrb[12].mxu1 %v1373_v2 }
 0x20b   :  { %v1297_v0 = vmax.f32 %v3621_v51, 0.0 }
 0x20c   :  { %v1334_v31 = vmax.f32 %v1294_v33, %v1296_v56 }
 0x20d   :  { %v1335_v22 = vmax.f32 %v1295_v62, %v1297_v0  ;;  %v1213_v7 = vpop.f32.mrb[36].mxu0 }
 0x20e   :  { %v3622_v28 = vadd.f32 %v1213_v7, %v5582_v55  ;;  %v1215_v13 = vpop.f32.mrb[37].mxu0 }
 0x20f   :  { %v3623_v38 = vadd.f32 %v1215_v13, %v5586_v5  ;;  %v1217_v4 = vpop.f32.mrb[38].mxu0 }
 0x210   :  { %v3624_v25 = vadd.f32 %v1217_v4, %v5582_v55  ;;  %v1219_v12 = vpop.f32.mrb[39].mxu0  ;;  %v1298_v36 = vmax.f32 %v3622_v28, 0.0 }
 0x211   :  { %v3625_v41 = vadd.f32 %v1219_v12, %v5586_v5  ;;  %v1299_v45 = vmax.f32 %v3623_v38, 0.0 }
 0x212   :  { %v1300_v37 = vmax.f32 %v3624_v25, 0.0 }
 0x213   :  { %v1301_v15 = vmax.f32 %v3625_v41, 0.0 }
 0x214   :  { %v1336_v20 = vmax.f32 %v1298_v36, %v1300_v37 }
 0x215   :  { %v1337_v29 = vmax.f32 %v1299_v45, %v1301_v15  ;;  %v1223_v16 = vpop.f32.mrb[40].mxu0 }
 0x216   :  { %v3626_v9 = vadd.f32 %v1223_v16, %v5582_v55  ;;  %v1225_v23 = vpop.f32.mrb[41].mxu0  ;;  %v1375_v46 = vpack.c.bf16 %v1336_v20, %v1334_v31 }
 0x217   :  { %v1376_v47 = vpack.c.bf16 %v1337_v29, %v1335_v22  ;;  %v3627_v8 = vadd.f32 %v1225_v23, %v5586_v5  ;;  %v1227_v42 = vpop.f32.mrb[42].mxu0 }
 0x218   :  { %v3628_v14 = vadd.f32 %v1227_v42, %v5582_v55  ;;  %v1229_v39 = vpop.f32.mrb[43].mxu0  ;;  %v1302_v54 = vmax.f32 %v3626_v9, 0.0 }
 0x219   :  { %v3629_v53 = vadd.f32 %v1229_v39, %v5586_v5  ;;  %3381 = vmatprep.mubr.msk.bf16.mxu1 %vm1486_vm4, %v1376_v47  ;;  %v1303_v57 = vmax.f32 %v3627_v8, 0.0 }
 0x21a   :  { %v1304_v59 = vmax.f32 %v3628_v14, 0.0  ;;  %1588 = vmatmul.mubr.bf16.gmra.mrb[16].mxu1 %v1375_v46 }
 0x21b   :  { %v1305_v50 = vmax.f32 %v3629_v53, 0.0 }
 0x21c   :  { %v1338_v1 = vmax.f32 %v1302_v54, %v1304_v59 }
 0x21d   :  { %v1339_v17 = vmax.f32 %v1303_v57, %v1305_v50  ;;  %v1233_v18 = vpop.f32.mrb[44].mxu0 }
 0x21e   :  { %v3630_v30 = vadd.f32 %v1233_v18, %v5582_v55  ;;  %v1235_v34 = vpop.f32.mrb[45].mxu0 }
 0x21f   :  { %v3631_v3 = vadd.f32 %v1235_v34, %v5586_v5  ;;  %v1237_v49 = vpop.f32.mrb[46].mxu0 }
 0x220   :  { %v3632_v35 = vadd.f32 %v1237_v49, %v5582_v55  ;;  %v1239_v10 = vpop.f32.mrb[47].mxu0  ;;  %v1306_v24 = vmax.f32 %v3630_v30, 0.0 }
 0x221   :  { %v3633_v40 = vadd.f32 %v1239_v10, %v5586_v5  ;;  %v1307_v19 = vmax.f32 %v3631_v3, 0.0 }
 0x222   :  { %v1308_v63 = vmax.f32 %v3632_v35, 0.0 }
 0x223   :  { %v1309_v43 = vmax.f32 %v3633_v40, 0.0 }
 0x224   :  { %v1340_v21 = vmax.f32 %v1306_v24, %v1308_v63 }
 0x225   :  { %v1341_v11 = vmax.f32 %v1307_v19, %v1309_v43  ;;  %v1243_v26 = vpop.f32.mrb[48].mxu0 }
 0x226   :  { %v3634_v48 = vadd.f32 %v1243_v26, %v5582_v55  ;;  %v1245_v2 = vpop.f32.mrb[49].mxu0  ;;  %v1377_v32 = vpack.c.bf16 %v1340_v21, %v1338_v1 }
 0x227   :  { %v1378_v58 = vpack.c.bf16 %v1341_v11, %v1339_v17  ;;  %v3635_v60 = vadd.f32 %v1245_v2, %v5586_v5  ;;  %v1247_v6 = vpop.f32.mrb[50].mxu0 }
 0x228   :  { %v3636_v27 = vadd.f32 %v1247_v6, %v5582_v55  ;;  %v1249_v51 = vpop.f32.mrb[51].mxu0  ;;  %v1310_v56 = vmax.f32 %v3634_v48, 0.0 }
 0x229   :  { %v3637_v33 = vadd.f32 %v1249_v51, %v5586_v5  ;;  %3382 = vmatprep.mubr.msk.bf16.mxu1 %vm1486_vm4, %v1378_v58  ;;  %v1311_v0 = vmax.f32 %v3635_v60, 0.0  ;;  %v4278_v51 = vld [vmem:[%s6365_s4] ss:$8 sps:$4 sm:$0xff]  }
 0x22a   :  { %v1312_v62 = vmax.f32 %v3636_v27, 0.0  ;;  %1598 = vmatmul.mubr.bf16.gmra.mrb[20].mxu1 %v1377_v32  ;;  %v4280_v27 = vld [vmem:[%s6365_s4 + $0x4] ss:$8 sps:$4 sm:$0xff]  }
 0x22b   :  { %v1313_v31 = vmax.f32 %v3637_v33, 0.0  ;;  %2294 = vmatprep.subr.bf16.mxu1 %v4280_v27  ;;  %v4283_v33 = vld [vmem:[%s6365_s4 + $0x14] ss:$8 sps:$4 sm:$0xff]  }
 0x22c   :  { %v1342_v22 = vmax.f32 %v1310_v56, %v1312_v62  ;;  %2295 = vmatpush1.bf16.msra.mxu1 %v4278_v51  ;;  %v4281_v56 = vld [vmem:[%s6365_s4 + $0x10] ss:$8 sps:$4 sm:$0xff]   ;;  %v4286_v62 = vld [vmem:[%s6365_s4 + $0x24] ss:$8 sps:$4 sm:$0xff]  }
 0x22d   :  { %v1343_v7 = vmax.f32 %v1311_v0, %v1313_v31  ;;  %v1253_v28 = vpop.f32.mrb[52].mxu0  ;;  %2296 = vmatprep.subr.bf16.mxu1 %v4283_v33  ;;  %v4284_v0 = vld [vmem:[%s6365_s4 + $0x20] ss:$8 sps:$4 sm:$0xff]  }
 0x22e   :  { %v3638_v13 = vadd.f32 %v1253_v28, %v5582_v55  ;;  %v1255_v38 = vpop.f32.mrb[53].mxu0  ;;  %v4320_v33 = vld [vmem:[%s6365_s4 + $0xe0] ss:$8 sps:$4 sm:$0xff]  }
 0x22f   :  { %v3639_v4 = vadd.f32 %v1255_v38, %v5586_v5  ;;  %v1257_v25 = vpop.f32.mrb[54].mxu0  ;;  %v4287_v38 = vld [vmem:[%s6365_s4 + $0x30] ss:$8 sps:$4 sm:$0xff]  }
 0x230   :  { %v3640_v12 = vadd.f32 %v1257_v25, %v5582_v55  ;;  %v1259_v41 = vpop.f32.mrb[55].mxu0  ;;  %v1314_v37 = vmax.f32 %v3638_v13, 0.0  ;;  %2297 = vmatpush1.bf16.msra.mxu1 %v4281_v56 }
 0x231   :  { %v3641_v36 = vadd.f32 %v1259_v41, %v5586_v5  ;;  %v1315_v15 = vmax.f32 %v3639_v4, 0.0  ;;  %2298 = vmatprep.subr.bf16.mxu1 %v4286_v62  ;;  %v4290_v41 = vld [vmem:[%s6365_s4 + $0x40] ss:$8 sps:$4 sm:$0xff]  }
 0x232   :  { %v1316_v45 = vmax.f32 %v3640_v12, 0.0  ;;  %v4292_v12 = vld [vmem:[%s6365_s4 + $0x44] ss:$8 sps:$4 sm:$0xff]  }
 0x233   :  { %v1317_v20 = vmax.f32 %v3641_v36, 0.0  ;;  %v4295_v36 = vld [vmem:[%s6365_s4 + $0x54] ss:$8 sps:$4 sm:$0xff]  }
 0x234   :  { %v1344_v29 = vmax.f32 %v1314_v37, %v1316_v45  ;;  %2299 = vmatpush1.bf16.msra.mxu1 %v4284_v0  ;;  %v4293_v37 = vld [vmem:[%s6365_s4 + $0x50] ss:$8 sps:$4 sm:$0xff]   ;;  %v4298_v45 = vld [vmem:[%s6365_s4 + $0x64] ss:$8 sps:$4 sm:$0xff]  }
 0x235   :  { %v1345_v16 = vmax.f32 %v1315_v15, %v1317_v20  ;;  %v4296_v15 = vld [vmem:[%s6365_s4 + $0x60] ss:$8 sps:$4 sm:$0xff]   ;;  %v4301_v20 = vld [vmem:[%s6365_s4 + $0x74] ss:$8 sps:$4 sm:$0xff]  }
 0x236   :  { %v1379_v9 = vpack.c.bf16 %v1344_v29, %v1342_v22  ;;  %v4299_v29 = vld [vmem:[%s6365_s4 + $0x70] ss:$8 sps:$4 sm:$0xff]  }
 0x237   :  { %v1380_v23 = vpack.c.bf16 %v1345_v16, %v1343_v7  ;;  %v4289_v7 = vld [vmem:[%s6365_s4 + $0x34] ss:$8 sps:$4 sm:$0xff]   ;;  %v4304_v16 = vld [vmem:[%s6365_s4 + $0x84] ss:$8 sps:$4 sm:$0xff]  }
 0x238   :  { %2300 = vmatprep.subr.bf16.mxu1 %v4289_v7 }
 0x239   :  { %3383 = vmatprep.mubr.msk.bf16.mxu1 %vm1486_vm4, %v1380_v23  ;;  %2301 = vmatpush1.bf16.msra.mxu1 %v4287_v38  ;;  %v4307_v23 = vld [vmem:[%s6365_s4 + $0x94] ss:$8 sps:$4 sm:$0xff]  }
 0x23a   :  { %1608 = vmatmul.mubr.bf16.gmra.mrb[24].mxu1 %v1379_v9  ;;  %2302 = vmatprep.subr.bf16.mxu1 %v4292_v12  ;;  %v4302_v9 = vld [vmem:[%s6365_s4 + $0x80] ss:$8 sps:$4 sm:$0xff]  }
 0x23d   :  { %2303 = vmatpush1.bf16.msra.mxu1 %v4290_v41 }
 0x23e   :  { %2304 = vmatprep.subr.bf16.mxu1 %v4295_v36 }
 0x241   :  { %2305 = vmatpush1.bf16.msra.mxu1 %v4293_v37 }
 0x242   :  { %2306 = vmatprep.subr.bf16.mxu1 %v4298_v45 }
 0x245   :  { %2307 = vmatpush1.bf16.msra.mxu1 %v4296_v15 }
 0x246   :  { %2308 = vmatprep.subr.bf16.mxu1 %v4301_v20 }
 0x249   :  { %2309 = vmatpush1.bf16.msra.mxu1 %v4299_v29 }
 0x24a   :  { %2310 = vmatprep.subr.bf16.mxu1 %v4304_v16 }
 0x24d   :  { %2311 = vmatpush1.bf16.msra.mxu1 %v4302_v9 }
 0x24e   :  { %2312 = vmatprep.subr.bf16.mxu1 %v4307_v23 }
 0x2ad   :  { %v5651_v46 = vpop.f32.mrb[0].mxu1 }
 0x2ae   :  { %v1551_v47 = vpop.f32.mrb[1].mxu1 }
 0x2af   :  { %v4021_v8 = vpack.i.bf16 %v1551_v47, %v5651_v46  ;;  %v5654_v55 = vpop.f32.mrb[2].mxu1  ;;  %v4305_v47 = vld [vmem:[%s6365_s4 + $0x90] ss:$8 sps:$4 sm:$0xff]  }
 0x2b0   :  { %v1555_v42 = vpop.f32.mrb[3].mxu1  ;;  %2313 = vmatpush1.bf16.msra.mxu1 %v4305_v47 }
 0x2b1   :  { %v3961_v5 = vpack.i.bf16 %v1555_v42, %v5654_v55  ;;  %v4308_v42 = vld [vmem:[%s6365_s4 + $0xa0] ss:$8 sps:$4 sm:$0xff]  }
 0x2b3   :  { %3962 = vrot.lane.b32.xlu0 %v3961_v5, %s4456_s2 }
 0x2bd   :  { %v5658_v14 = vpop.f32.mrb[4].mxu1 }
 0x2be   :  { %v1561_v39 = vpop.f32.mrb[5].mxu1 }
 0x2bf   :  { %v3966_v53 = vpack.i.bf16 %v1561_v39, %v5658_v14  ;;  %v5661_v54 = vpop.f32.mrb[6].mxu1  ;;  %v4313_v39 = vld [vmem:[%s6365_s4 + $0xb4] ss:$8 sps:$4 sm:$0xff]  }
 0x2c0   :  { %v1565_v59 = vpop.f32.mrb[7].mxu1 }
 0x2c1   :  { %v3971_v57 = vpack.i.bf16 %v1565_v59, %v5661_v54  ;;  %3967 = vrot.lane.b32.xlu1 %v3966_v53, %s4456_s2  ;;  %v4311_v53 = vld [vmem:[%s6365_s4 + $0xb0] ss:$8 sps:$4 sm:$0xff]  }
 0x2c3   :  { %3972 = vrot.lane.b32.xlu0 %v3971_v57, %s4456_s2 }
 0x2cd   :  { %v5666_v50 = vpop.f32.mrb[8].mxu1 }
 0x2ce   :  { %v1571_v1 = vpop.f32.mrb[9].mxu1 }
 0x2cf   :  { %v3976_v17 = vpack.i.bf16 %v1571_v1, %v5666_v50  ;;  %v5669_v18 = vpop.f32.mrb[10].mxu1  ;;  %v4314_v1 = vld [vmem:[%s6365_s4 + $0xc0] ss:$8 sps:$4 sm:$0xff]  }
 0x2d0   :  { %v1575_v30 = vpop.f32.mrb[11].mxu1 }
 0x2d1   :  { %v3981_v34 = vpack.i.bf16 %v1575_v30, %v5669_v18  ;;  %3977 = vrot.lane.b32.xlu1 %v3976_v17, %s4456_s2  ;;  %v4316_v17 = vld [vmem:[%s6365_s4 + $0xc4] ss:$8 sps:$4 sm:$0xff]  }
 0x2d3   :  { %3982 = vrot.lane.b32.xlu0 %v3981_v34, %s4456_s2  ;;  %v4319_v34 = vld [vmem:[%s6365_s4 + $0xd4] ss:$8 sps:$4 sm:$0xff]  }
 0x2dd   :  { %v5674_v3 = vpop.f32.mrb[12].mxu1 }
 0x2de   :  { %v1581_v49 = vpop.f32.mrb[13].mxu1 }
 0x2df   :  { %v3986_v35 = vpack.i.bf16 %v1581_v49, %v5674_v3  ;;  %v5677_v10 = vpop.f32.mrb[14].mxu1 }
 0x2e0   :  { %v1585_v40 = vpop.f32.mrb[15].mxu1 }
 0x2e1   :  { %v3991_v24 = vpack.i.bf16 %v1585_v40, %v5677_v10  ;;  %3987 = vrot.lane.b32.xlu1 %v3986_v35, %s4456_s2 }
 0x2e3   :  { %3992 = vrot.lane.b32.xlu0 %v3991_v24, %s4456_s2 }
 0x2ed   :  { %v5682_v63 = vpop.f32.mrb[16].mxu1 }
 0x2ee   :  { %v1591_v19 = vpop.f32.mrb[17].mxu1 }
 0x2ef   :  { %v3996_v43 = vpack.i.bf16 %v1591_v19, %v5682_v63  ;;  %v5685_v21 = vpop.f32.mrb[18].mxu1  ;;  %v4317_v19 = vld [vmem:[%s6365_s4 + $0xd0] ss:$8 sps:$4 sm:$0xff]  }
 0x2f0   :  { %v1595_v11 = vpop.f32.mrb[19].mxu1 }
 0x2f1   :  { %v4001_v26 = vpack.i.bf16 %v1595_v11, %v5685_v21  ;;  %3997 = vrot.lane.b32.xlu1 %v3996_v43, %s4456_s2 }
 0x2f3   :  { %4002 = vrot.lane.b32.xlu0 %v4001_v26, %s4456_s2 }
 0x2fd   :  { %v5690_v48 = vpop.f32.mrb[20].mxu1 }
 0x2fe   :  { %v1601_v2 = vpop.f32.mrb[21].mxu1 }
 0x2ff   :  { %v4006_v32 = vpack.i.bf16 %v1601_v2, %v5690_v48  ;;  %v5693_v58 = vpop.f32.mrb[22].mxu1  ;;  %v4322_v2 = vld [vmem:[%s6365_s4 + $0xe4] ss:$8 sps:$4 sm:$0xff]  }
 0x300   :  { %v1605_v60 = vpop.f32.mrb[23].mxu1 }
 0x301   :  { %v4011_v6 = vpack.i.bf16 %v1605_v60, %v5693_v58  ;;  %4007 = vrot.lane.b32.xlu1 %v4006_v32, %s4456_s2 }
 0x303   :  { %4012 = vrot.lane.b32.xlu0 %v4011_v6, %s4456_s2 }
 0x307   :  { %4022 = vrot.lane.b32.xlu0 %v4021_v8, %s4456_s2  ;;  %v4310_v8 = vld [vmem:[%s6365_s4 + $0xa4] ss:$8 sps:$4 sm:$0xff]  }
 0x308   :  { %2314 = vmatprep.subr.bf16.mxu1 %v4310_v8 }
 0x309   :  { %2315 = vmatpush1.bf16.msra.mxu1 %v4308_v42 }
 0x30a   :  { %2316 = vmatprep.subr.bf16.mxu1 %v4313_v39 }
 0x30d   :  { %v5717_v31 = vpop.f32.mrb[24].mxu1  ;;  %2317 = vmatpush1.bf16.msra.mxu1 %v4311_v53 }
 0x30e   :  { %v1611_v22 = vpop.f32.mrb[25].mxu1  ;;  %2318 = vmatprep.subr.bf16.mxu1 %v4316_v17 }
 0x30f   :  { %v4016_v28 = vpack.i.bf16 %v1611_v22, %v5717_v31  ;;  %v5723_v13 = vpop.f32.mrb[26].mxu1 }
 0x310   :  { %v5728_v4 = vpop.f32.mrb[27].mxu1 }
 0x311   :  { %v4106_v25 = vpack.i.bf16 %v5728_v4, %v5723_v13  ;;  %4017 = vrot.lane.b32.xlu1 %v4016_v28, %s4456_s2  ;;  %2319 = vmatpush1.bf16.msra.mxu1 %v4314_v1 }
 0x312   :  { %2320 = vmatprep.subr.bf16.mxu1 %v4319_v34 }
 0x315   :  { %2321 = vmatpush1.bf16.msra.mxu1 %v4317_v19 }
 0x316   :  { %2322 = vmatprep.subr.bf16.mxu1 %v4322_v2 }
 0x319   :  { %2323 = vmatpush1.bf16.msra.mxu1 %v4320_v33 }
 0x325   :  { %v3963_v5 = vpop.permute.xlu0 %3962 }
 0x326   :  { %v3965_v59 = vunpack.i.h.bf16 %v3963_v5  ;;  %v3964_v57 = vunpack.i.l.bf16 %v3963_v5 }
 0x328   :  { %v1704_v49 = vsel %vm1702_vm5, %v3964_v57, %v3965_v59 }
 0x329   :  { %v5802_v60 = vmax.f32 %v5654_v55, %v1704_v49 }
 0x333   :  { %v3968_v30 = vpop.permute.xlu1 %3967 }
 0x334   :  { %v3970_v35 = vunpack.i.h.bf16 %v3968_v30  ;;  %v3969_v40 = vunpack.i.l.bf16 %v3968_v30 }
 0x335   :  { %v3973_v24 = vpop.permute.xlu0 %3972 }
 0x336   :  { %v1705_v43 = vsel %vm1702_vm5, %v3969_v40, %v3970_v35  ;;  %v3975_v11 = vunpack.i.h.bf16 %v3973_v24  ;;  %v3974_v26 = vunpack.i.l.bf16 %v3973_v24 }
 0x337   :  { %v5799_v32 = vmax.f32 %v5658_v14, %v1705_v43  ;;  %v4323_v14 = vld [vmem:[%s6365_s4 + $0xf0] ss:$8 sps:$4 sm:$0xff]  }
 0x338   :  { %v1706_v6 = vsel %vm1702_vm5, %v3974_v26, %v3975_v11 }
 0x339   :  { %v5806_v27 = vmax.f32 %v5661_v54, %v1706_v6  ;;  %v4026_v51 = vpack.i.bf16 %v5799_v32, %v5802_v60  ;;  %v4325_v54 = vld [vmem:[%s6365_s4 + $0xf4] ss:$8 sps:$4 sm:$0xff]  }
 0x33a   :  { %2324 = vmatprep.subr.bf16.mxu1 %v4325_v54 }
 0x33b   :  { %4027 = vrot.lane.b32.xlu1 %v4026_v51, %s4457_s24  ;;  %v4031_v55 = vpack.i.bf16 %v5806_v27, %v5799_v32  ;;  %2325 = vmatpush1.bf16.msra.mxu1 %v4323_v14 }
 0x33d   :  { %4032 = vrot.lane.b32.xlu0 %v4031_v55, %s4458_s25 }
 0x343   :  { %v3978_v56 = vpop.permute.xlu1 %3977 }
 0x344   :  { %v3980_v62 = vunpack.i.h.bf16 %v3978_v56  ;;  %v3979_v0 = vunpack.i.l.bf16 %v3978_v56 }
 0x345   :  { %v3983_v22 = vpop.permute.xlu0 %3982 }
 0x346   :  { %v1707_v7 = vsel %vm1702_vm5, %v3979_v0, %v3980_v62  ;;  %v3985_v28 = vunpack.i.h.bf16 %v3983_v22  ;;  %v3984_v38 = vunpack.i.l.bf16 %v3983_v22 }
 0x347   :  { %v5825_v12 = vmax.f32 %v5666_v50, %v1707_v7 }
 0x348   :  { %v1708_v41 = vsel %vm1702_vm5, %v3984_v38, %v3985_v28 }
 0x349   :  { %v5829_v36 = vmax.f32 %v5669_v18, %v1708_v41  ;;  %v4041_v37 = vpack.i.bf16 %v5825_v12, %v5806_v27 }
 0x34b   :  { %4042 = vrot.lane.b32.xlu0 %v4041_v37, %s4457_s24  ;;  %4037 = vrot.lane.b32.xlu1 %v4041_v37, %s4459_s29  ;;  %v4046_v45 = vpack.i.bf16 %v5829_v36, %v5825_v12 }
 0x34f   :  { %4047 = vrot.lane.b32.xlu1 %v4046_v45, %s4458_s25 }
 0x353   :  { %v3988_v50 = vpop.permute.xlu1 %3987 }
 0x354   :  { %v3990_v15 = vunpack.i.h.bf16 %v3988_v50  ;;  %v3989_v20 = vunpack.i.l.bf16 %v3988_v50 }
 0x355   :  { %v3993_v29 = vpop.permute.xlu0 %3992 }
 0x356   :  { %v1709_v18 = vsel %vm1702_vm5, %v3989_v20, %v3990_v15  ;;  %v3995_v16 = vunpack.i.h.bf16 %v3993_v29  ;;  %v3994_v9 = vunpack.i.l.bf16 %v3993_v29 }
 0x357   :  { %v5840_v23 = vmax.f32 %v5674_v3, %v1709_v18  ;;  %v4328_v3 = vld [vmem:[%s6365_s4 + $0x104] ss:$8 sps:$4 sm:$0xff]  }
 0x358   :  { %v1710_v47 = vsel %vm1702_vm5, %v3994_v9, %v3995_v16  ;;  %2377 = vmatprep.subr.bf16.mxu1 %v4328_v3  ;;  %v4331_v3 = vld [vmem:[%s6365_s4 + $0x114] ss:$8 sps:$4 sm:$0xff]  }
 0x359   :  { %v5844_v8 = vmax.f32 %v5677_v10, %v1710_v47  ;;  %v4051_v42 = vpack.i.bf16 %v5840_v23, %v5829_v36 }
 0x35b   :  { %4052 = vrot.lane.b32.xlu0 %v4051_v42, %s4459_s29  ;;  %4057 = vrot.lane.b32.xlu1 %v4051_v42, %s4457_s24  ;;  %v4061_v5 = vpack.i.bf16 %v5844_v8, %v5840_v23 }
 0x35f   :  { %4062 = vrot.lane.b32.xlu0 %v4061_v5, %s4458_s25 }
 0x363   :  { %v3998_v39 = vpop.permute.xlu1 %3997 }
 0x364   :  { %v4000_v10 = vunpack.i.h.bf16 %v3998_v39  ;;  %v3999_v53 = vunpack.i.l.bf16 %v3998_v39  ;;  %v4329_v39 = vld [vmem:[%s6365_s4 + $0x110] ss:$8 sps:$4 sm:$0xff]  }
 0x365   :  { %v4003_v59 = vpop.permute.xlu0 %4002 }
 0x366   :  { %v1711_v57 = vsel %vm1702_vm5, %v3999_v53, %v4000_v10  ;;  %v4005_v1 = vunpack.i.h.bf16 %v4003_v59  ;;  %v4004_v17 = vunpack.i.l.bf16 %v4003_v59  ;;  %v4334_v10 = vld [vmem:[%s6365_s4 + $0x124] ss:$8 sps:$4 sm:$0xff]  }
 0x367   :  { %v5858_v30 = vmax.f32 %v5682_v63, %v1711_v57  ;;  %v4332_v57 = vld [vmem:[%s6365_s4 + $0x120] ss:$8 sps:$4 sm:$0xff]  }
 0x368   :  { %v1712_v34 = vsel %vm1702_vm5, %v4004_v17, %v4005_v1  ;;  %v4337_v1 = vld [vmem:[%s6365_s4 + $0x134] ss:$8 sps:$4 sm:$0xff]  }
 0x369   :  { %v5862_v49 = vmax.f32 %v5685_v21, %v1712_v34  ;;  %v4071_v35 = vpack.i.bf16 %v5858_v30, %v5844_v8 }
 0x36b   :  { %4072 = vrot.lane.b32.xlu0 %v4071_v35, %s4457_s24  ;;  %4067 = vrot.lane.b32.xlu1 %v4071_v35, %s4459_s29  ;;  %v4076_v40 = vpack.i.bf16 %v5862_v49, %v5858_v30 }
 0x36f   :  { %4077 = vrot.lane.b32.xlu1 %v4076_v40, %s4458_s25 }
 0x373   :  { %v4008_v24 = vpop.permute.xlu1 %4007 }
 0x374   :  { %v4010_v63 = vunpack.i.h.bf16 %v4008_v24  ;;  %v4009_v19 = vunpack.i.l.bf16 %v4008_v24 }
 0x375   :  { %v4013_v43 = vpop.permute.xlu0 %4012 }
 0x376   :  { %v1713_v11 = vsel %vm1702_vm5, %v4009_v19, %v4010_v63  ;;  %v4015_v21 = vunpack.i.h.bf16 %v4013_v43  ;;  %v4014_v26 = vunpack.i.l.bf16 %v4013_v43  ;;  %v4335_v63 = vld [vmem:[%s6365_s4 + $0x130] ss:$8 sps:$4 sm:$0xff]  }
 0x377   :  { %v1741_v2 = vmax.f32 %v5690_v48, %v1713_v11  ;;  %v4340_v11 = vld [vmem:[%s6365_s4 + $0x144] ss:$8 sps:$4 sm:$0xff]  }
 0x378   :  { %v1714_v6 = vsel %vm1702_vm5, %v4014_v26, %v4015_v21 }
 0x379   :  { %v1742_v51 = vmax.f32 %v5693_v58, %v1714_v6  ;;  %v4081_v33 = vpack.i.bf16 %v1741_v2, %v5862_v49  ;;  %v4023_v0 = vpop.permute.xlu0 %4022 }
 0x37a   :  { %v4025_v22 = vunpack.i.h.bf16 %v4023_v0  ;;  %v4024_v7 = vunpack.i.l.bf16 %v4023_v0  ;;  %v4344_v0 = vld [vmem:[%s6365_s4 + $0x160] ss:$8 sps:$4 sm:$0xff]  }
 0x37b   :  { %4082 = vrot.lane.b32.xlu0 %v4081_v33, %s4459_s29  ;;  %4087 = vrot.lane.b32.xlu1 %v4081_v33, %s4457_s24  ;;  %v4091_v55 = vpack.i.bf16 %v1742_v51, %v1741_v2 }
 0x37f   :  { %4092 = vrot.lane.b32.xlu0 %v4091_v55, %s4458_s25 }
 0x383   :  { %4102 = vrot.lane.b32.xlu0 %v4046_v45, %s4460_s15  ;;  %v4018_v14 = vpop.permute.xlu1 %4017 }
 0x384   :  { %v4020_v54 = vunpack.i.h.bf16 %v4018_v14  ;;  %v4019_v56 = vunpack.i.l.bf16 %v4018_v14  ;;  %v4338_v14 = vld [vmem:[%s6365_s4 + $0x140] ss:$8 sps:$4 sm:$0xff]  }
 0x386   :  { %v1715_v48 = vsel %vm1702_vm5, %v4019_v56, %v4020_v54  ;;  %v4346_v56 = vld [vmem:[%s6365_s4 + $0x164] ss:$8 sps:$4 sm:$0xff]  }
 0x387   :  { %4112 = vrot.lane.b32.xlu0 %v4061_v5, %s4460_s15  ;;  %v5883_v58 = vmax.f32 %v5717_v31, %v1715_v48  ;;  %v1703_v31 = vsel %vm1702_vm5, %v4024_v7, %v4025_v22  ;;  %v4326_v5 = vld [vmem:[%s6365_s4 + $0x100] ss:$8 sps:$4 sm:$0xff]   ;;  %v4349_v22 = vld [vmem:[%s6365_s4 + $0x174] ss:$8 sps:$4 sm:$0xff]  }
 0x388   :  { %v1731_v15 = vmax.f32 %v5651_v46, %v1703_v31 }
 0x389   :  { %v4096_v62 = vpack.i.bf16 %v5883_v58, %v1742_v51 }
 0x38b   :  { %4122 = vrot.lane.b32.xlu0 %v4091_v55, %s4460_s15  ;;  %4097 = vrot.lane.b32.xlu1 %v4096_v62, %s4459_s29 }
 0x38f   :  { %4107 = vrot.lane.b32.xlu1 %v4106_v25, %s4456_s2 }
 0x393   :  { %4117 = vrot.lane.b32.xlu1 %v4076_v40, %s4460_s15 }
 0x3ad   :  { %v4028_v28 = vpop.permute.xlu1 %4027 }
 0x3ae   :  { %v4030_v41 = vunpack.i.h.bf16 %v4028_v28  ;;  %v4029_v37 = vunpack.i.l.bf16 %v4028_v28 }
 0x3af   :  { %v4033_v38 = vpop.permute.xlu0 %4032 }
 0x3b0   :  { %v4035_v45 = vunpack.i.h.bf16 %v4033_v38  ;;  %v4034_v50 = vunpack.i.l.bf16 %v4033_v38  ;;  %v1880_v29 = vsel %vm1878_vm6, %v5802_v60, %v4030_v41  ;;  %v1879_v18 = vsel %vm1878_vm6, %v1731_v15, %v4029_v37  ;;  %v4352_v15 = vld [vmem:[%s6365_s4 + $0x184] ss:$8 sps:$4 sm:$0xff]  }
 0x3b1   :  { %v1974_v60 = vpack.c.bf16 %v1880_v29, %v1879_v18 }
 0x3b2   :  { %v1889_v16 = vsel %vm1486_vm4, %v4029_v37, %v4034_v50  ;;  %v1890_v9 = vsel %vm1486_vm4, %v4030_v41, %v4035_v45  ;;  %v4347_v37 = vld [vmem:[%s6365_s4 + $0x170] ss:$8 sps:$4 sm:$0xff]  }
 0x3bd   :  { %v5895_v20 = vpop.permute.xlu1 %4037  ;;  %v4043_v53 = vpop.permute.xlu0 %4042 }
 0x3be   :  { %v4040_v4 = vunpack.i.h.bf16 %v5895_v20  ;;  %v4039_v25 = vunpack.i.l.bf16 %v5895_v20  ;;  %v4045_v17 = vunpack.i.h.bf16 %v4043_v53  ;;  %v4044_v34 = vunpack.i.l.bf16 %v4043_v53 }
 0x3c0   :  { %v1900_v46 = vsel %vm1899_vm7, %v1889_v16, %v4039_v25  ;;  %v1901_v47 = vsel %vm1899_vm7, %v1890_v9, %v4040_v4  ;;  %v1881_v2 = vsel %vm1878_vm6, %v5799_v32, %v4044_v34  ;;  %v1882_v6 = vsel %vm1878_vm6, %v5806_v27, %v4045_v17  ;;  %v4343_v32 = vld [vmem:[%s6365_s4 + $0x154] ss:$8 sps:$4 sm:$0xff]   ;;  %v4341_v27 = vld [vmem:[%s6365_s4 + $0x150] ss:$8 sps:$4 sm:$0xff]  }
 0x3c1   :  { %v1975_v42 = vpack.c.bf16 %v1901_v47, %v1900_v46  ;;  %v4048_v59 = vpop.permute.xlu1 %4047  ;;  %v1978_v54 = vpack.c.bf16 %v1882_v6, %v1881_v2 }
 0x3c2   :  { %v4050_v35 = vunpack.i.h.bf16 %v4048_v59  ;;  %v4049_v40 = vunpack.i.l.bf16 %v4048_v59 }
 0x3c3   :  { %2326 = vmatprep.mubr.bf16.mxu1 %v1975_v42 }
 0x3c4   :  { %2327 = vmatmul.mubr.bf16.vlgmr.msra.gmra.mrb[28].mxu1 %v1974_v60  ;;  %v1892_v21 = vsel %vm1486_vm4, %v4045_v17, %v4050_v35  ;;  %v1891_v26 = vsel %vm1486_vm4, %v4044_v34, %v4049_v40 }
 0x3c5   :  { %2378 = vmatpush1.bf16.msra.mxu1 %v4326_v5  ;;  %v4350_v5 = vld [vmem:[%s6365_s4 + $0x180] ss:$8 sps:$4 sm:$0xff]  }
 0x3c6   :  { %2379 = vmatprep.subr.bf16.mxu1 %v4331_v3  ;;  %v4353_v3 = vld [vmem:[%s6365_s4 + $0x190] ss:$8 sps:$4 sm:$0xff]  }
 0x3c9   :  { %2380 = vmatpush1.bf16.msra.mxu1 %v4329_v39 }
 0x3ca   :  { %2381 = vmatprep.subr.bf16.mxu1 %v4334_v10 }
 0x3cd   :  { %v5928_v24 = vpop.permute.xlu0 %4052  ;;  %2382 = vmatpush1.bf16.msra.mxu1 %v4332_v57  ;;  %v4058_v48 = vpop.permute.xlu1 %4057 }
 0x3ce   :  { %v4055_v19 = vunpack.i.h.bf16 %v5928_v24  ;;  %v4054_v43 = vunpack.i.l.bf16 %v5928_v24  ;;  %2383 = vmatprep.subr.bf16.mxu1 %v4337_v1  ;;  %v4060_v7 = vunpack.i.h.bf16 %v4058_v48  ;;  %v4059_v28 = vunpack.i.l.bf16 %v4058_v48 }
 0x3d0   :  { %v1902_v51 = vsel %vm1899_vm7, %v1891_v26, %v4054_v43  ;;  %v1903_v33 = vsel %vm1899_vm7, %v1892_v21, %v4055_v19  ;;  %v1883_v16 = vsel %vm1878_vm6, %v5825_v12, %v4059_v28  ;;  %v1884_v9 = vsel %vm1878_vm6, %v5829_v36, %v4060_v7  ;;  %v4355_v12 = vld [vmem:[%s6365_s4 + $0x194] ss:$8 sps:$4 sm:$0xff]   ;;  %v1973_v36 = vld [vmem:[%s6365_s4 + $0x1a0] sm:$0x33] }
 0x3d1   :  { %v1979_v55 = vpack.c.bf16 %v1903_v33, %v1902_v51  ;;  %2384 = vmatpush1.bf16.msra.mxu1 %v4335_v63  ;;  %v4063_v62 = vpop.permute.xlu0 %4062  ;;  %v1982_v60 = vpack.c.bf16 %v1884_v9, %v1883_v16  ;;  %v3437_v39 = vcombine.high %v1973_v36, %v1973_v36  ;;  %v3436_v10 = vcombine.low %v1973_v36, %v1973_v36 }
 0x3d2   :  { %2385 = vmatprep.subr.bf16.mxu1 %v4340_v11  ;;  %v4065_v38 = vunpack.i.h.bf16 %v4063_v62  ;;  %v4064_v31 = vunpack.i.l.bf16 %v4063_v62 }
 0x3d3   :  { %2336 = vmatprep.mubr.bf16.mxu1 %v1979_v55  ;;  %v2289_v57 = vsel %vm2287_vm8, %v3436_v10, 0  ;;  %v4358_v10 = vld [vmem:[%s6366_s6] ss:$8 sps:$4 sm:$0xff]  }
 0x3d4   :  { %2337 = vmatmul.mubr.bf16.gmra.mrb[32].mxu1 %v1978_v54  ;;  %v1893_v29 = vsel %vm1486_vm4, %v4059_v28, %v4064_v31  ;;  %v1894_v18 = vsel %vm1486_vm4, %v4060_v7, %v4065_v38 }
 0x3d5   :  { %2386 = vmatpush1.bf16.msra.mxu1 %v4338_v14 }
 0x3d6   :  { %2387 = vmatprep.subr.bf16.mxu1 %v4343_v32 }
 0x3d9   :  { %2388 = vmatpush1.bf16.msra.mxu1 %v4341_v27 }
 0x3da   :  { %2389 = vmatprep.subr.bf16.mxu1 %v4346_v56 }
 0x3dd   :  { %v5968_v41 = vpop.permute.xlu1 %4067  ;;  %2390 = vmatpush1.bf16.msra.mxu1 %v4344_v0  ;;  %v4073_v53 = vpop.permute.xlu0 %4072 }
 0x3de   :  { %v4070_v45 = vunpack.i.h.bf16 %v5968_v41  ;;  %v4069_v50 = vunpack.i.l.bf16 %v5968_v41  ;;  %2391 = vmatprep.subr.bf16.mxu1 %v4349_v22  ;;  %v4075_v1 = vunpack.i.h.bf16 %v4073_v53  ;;  %v4074_v17 = vunpack.i.l.bf16 %v4073_v53  ;;  %v4363_v53 = vld [vmem:[%s6366_s6 + $0x14] ss:$8 sps:$4 sm:$0xff]  }
 0x3e0   :  { %v1904_v46 = vsel %vm1899_vm7, %v1893_v29, %v4069_v50  ;;  %v1905_v47 = vsel %vm1899_vm7, %v1894_v18, %v4070_v45  ;;  %v1885_v2 = vsel %vm1878_vm6, %v5840_v23, %v4074_v17  ;;  %v1886_v6 = vsel %vm1878_vm6, %v5844_v8, %v4075_v1 }
 0x3e1   :  { %v1983_v42 = vpack.c.bf16 %v1905_v47, %v1904_v46  ;;  %2392 = vmatpush1.bf16.msra.mxu1 %v4347_v37  ;;  %v4078_v59 = vpop.permute.xlu1 %4077  ;;  %v1986_v54 = vpack.c.bf16 %v1886_v6, %v1885_v2  ;;  %v4367_v2 = vld [vmem:[%s6366_s6 + $0x30] ss:$8 sps:$4 sm:$0xff]   ;;  %v4372_v6 = vld [vmem:[%s6366_s6 + $0x44] ss:$8 sps:$4 sm:$0xff]  }
 0x3e2   :  { %2393 = vmatprep.subr.bf16.mxu1 %v4352_v15  ;;  %v4080_v34 = vunpack.i.h.bf16 %v4078_v59  ;;  %v4079_v35 = vunpack.i.l.bf16 %v4078_v59 }
 0x3e3   :  { %2346 = vmatprep.mubr.bf16.mxu1 %v1983_v42 }
 0x3e4   :  { %2347 = vmatmul.mubr.bf16.gmra.mrb[36].mxu1 %v1982_v60  ;;  %v1896_v21 = vsel %vm1486_vm4, %v4075_v1, %v4080_v34  ;;  %v1895_v26 = vsel %vm1486_vm4, %v4074_v17, %v4079_v35  ;;  %v4364_v34 = vld [vmem:[%s6366_s6 + $0x20] ss:$8 sps:$4 sm:$0xff]   ;;  %v4369_v35 = vld [vmem:[%s6366_s6 + $0x34] ss:$8 sps:$4 sm:$0xff]  }
 0x3e5   :  { %2394 = vmatpush1.bf16.msra.mxu1 %v4350_v5 }
 0x3e6   :  { %2395 = vmatprep.subr.bf16.mxu1 %v4355_v12 }
 0x3e9   :  { %2396 = vmatpush1.bf16.msra.mxu1 %v4353_v3 }
 0x3ea   :  { %3438 = vmatprep.subr.msk.bf16.mxu1 %vm2287_vm8, %v3437_v39 }
 0x3ed   :  { %v6004_v40 = vpop.permute.xlu0 %4082  ;;  %2398 = vmatpush1.bf16.msra.mxu1 %v2289_v57  ;;  %v4088_v56 = vpop.permute.xlu1 %4087 }
 0x3ee   :  { %v4085_v63 = vunpack.i.h.bf16 %v6004_v40  ;;  %v4084_v11 = vunpack.i.l.bf16 %v6004_v40  ;;  %v4090_v28 = vunpack.i.h.bf16 %v4088_v56  ;;  %v4089_v38 = vunpack.i.l.bf16 %v4088_v56  ;;  %v4373_v56 = vld [vmem:[%s6366_s6 + $0x50] ss:$8 sps:$4 sm:$0xff]   ;;  %v4376_v40 = vld [vmem:[%s6366_s6 + $0x60] ss:$8 sps:$4 sm:$0xff]  }
 0x3f0   :  { %v1906_v51 = vsel %vm1899_vm7, %v1895_v26, %v4084_v11  ;;  %v1907_v33 = vsel %vm1899_vm7, %v1896_v21, %v4085_v63  ;;  %v1887_v46 = vsel %vm1878_vm6, %v5858_v30, %v4089_v38  ;;  %v4360_v30 = vld [vmem:[%s6366_s6 + $0x4] ss:$8 sps:$4 sm:$0xff]  }
 0x3f1   :  { %v4093_v55 = vpop.permute.xlu0 %4092  ;;  %v1987_v14 = vpack.c.bf16 %v1907_v33, %v1906_v51  ;;  %2625 = vmatprep.subr.bf16.mxu1 %v4360_v30 }
 0x3f2   :  { %v4095_v31 = vunpack.i.h.bf16 %v4093_v55  ;;  %v4094_v37 = vunpack.i.l.bf16 %v4093_v55 }
 0x3f3   :  { %2356 = vmatprep.mubr.bf16.mxu1 %v1987_v14 }
 0x3f4   :  { %2357 = vmatmul.mubr.bf16.gmra.mrb[40].mxu1 %v1986_v54  ;;  %v1897_v16 = vsel %vm1486_vm4, %v4089_v38, %v4094_v37  ;;  %v1898_v9 = vsel %vm1486_vm4, %v4090_v28, %v4095_v31  ;;  %v4370_v54 = vld [vmem:[%s6366_s6 + $0x40] ss:$8 sps:$4 sm:$0xff]  }
 0x3f5   :  { %v4103_v32 = vpop.permute.xlu0 %4102 }
 0x3f6   :  { %v4105_v27 = vunpack.i.h.bf16 %v4103_v32  ;;  %v4104_v23 = vunpack.i.l.bf16 %v4103_v32 }
 0x3f8   :  { %v1911_v8 = vsel %vm1910_vm9, %v4039_v25, %v4104_v23  ;;  %v1912_v48 = vsel %vm1910_vm9, %v4040_v4, %v4105_v27  ;;  %v1977_v36 = vpack.c.bf16 %v4105_v27, %v4104_v23  ;;  %v4375_v23 = vld [vmem:[%s6366_s6 + $0x54] ss:$8 sps:$4 sm:$0xff]  }
 0x3f9   :  { %v1976_v62 = vpack.c.bf16 %v1912_v48, %v1911_v8  ;;  %v4113_v0 = vpop.permute.xlu0 %4112  ;;  %v4379_v8 = vld [vmem:[%s6366_s6 + $0x70] ss:$8 sps:$4 sm:$0xff]   ;;  %v4384_v48 = vld [vmem:[%s6366_s6 + $0x84] ss:$8 sps:$4 sm:$0xff]  }
 0x3fa   :  { %v4115_v22 = vunpack.i.h.bf16 %v4113_v0  ;;  %v4114_v7 = vunpack.i.l.bf16 %v4113_v0  ;;  %v4387_v0 = vld [vmem:[%s6366_s6 + $0x94] ss:$8 sps:$4 sm:$0xff]  }
 0x3fc   :  { %v1913_v15 = vsel %vm1910_vm9, %v4054_v43, %v4114_v7  ;;  %v1914_v25 = vsel %vm1910_vm9, %v4055_v19, %v4115_v22  ;;  %v1888_v43 = vsel %vm1878_vm6, %v5862_v49, %v4090_v28  ;;  %v1981_v59 = vpack.c.bf16 %v4115_v22, %v4114_v7  ;;  %v4385_v22 = vld [vmem:[%s6366_s6 + $0x90] ss:$8 sps:$4 sm:$0xff]  }
 0x3fd   :  { %v6032_v29 = vpop.permute.xlu1 %4097  ;;  %v1980_v20 = vpack.c.bf16 %v1914_v25, %v1913_v15  ;;  %v1990_v12 = vpack.c.bf16 %v1888_v43, %v1887_v46  ;;  %v4123_v26 = vpop.permute.xlu0 %4122 }
 0x3fe   :  { %v4100_v4 = vunpack.i.h.bf16 %v6032_v29  ;;  %v4099_v18 = vunpack.i.l.bf16 %v6032_v29  ;;  %v4125_v51 = vunpack.i.h.bf16 %v4123_v26  ;;  %v4124_v33 = vunpack.i.l.bf16 %v4123_v26 }
 0x400   :  { %v1908_v24 = vsel %vm1899_vm7, %v1897_v16, %v4099_v18  ;;  %v1909_v19 = vsel %vm1899_vm7, %v1898_v9, %v4100_v4  ;;  %v1989_v27 = vpack.c.bf16 %v4125_v51, %v4124_v33  ;;  %v1918_v41 = vsel %vm1910_vm9, %v4085_v63, %v4125_v51  ;;  %v4381_v63 = vld [vmem:[%s6366_s6 + $0x74] ss:$8 sps:$4 sm:$0xff]  }
 0x401   :  { %v4108_v47 = vpop.permute.xlu1 %4107  ;;  %v1991_v42 = vpack.c.bf16 %v1909_v19, %v1908_v24 }
 0x402   :  { %v4110_v5 = vunpack.i.h.bf16 %v4108_v47  ;;  %v4109_v60 = vunpack.i.l.bf16 %v4108_v47 }
 0x403   :  { %2366 = vmatprep.mubr.bf16.mxu1 %v1991_v42 }
 0x404   :  { %v1716_v49 = vsel %vm1702_vm5, %v4109_v60, %v4110_v5  ;;  %2367 = vmatmul.mubr.bf16.gmra.mrb[44].mxu1 %v1990_v12 }
 0x405   :  { %3439 = vmatprep.mubr.msk.bf16.mxu1 %vm2271_vm10, %v1977_v36  ;;  %v1744_v3 = vmax.f32 %v5723_v13, %v1716_v49  ;;  %v4118_v57 = vpop.permute.xlu1 %4117  ;;  %v4361_v13 = vld [vmem:[%s6366_s6 + $0x10] ss:$8 sps:$4 sm:$0xff]  }
 0x406   :  { %v4120_v1 = vunpack.i.h.bf16 %v4118_v57  ;;  %v4119_v17 = vunpack.i.l.bf16 %v4118_v57 }
 0x407   :  { %v4126_v39 = vpack.i.bf16 %v1744_v3, %v5883_v58  ;;  %v4366_v58 = vld [vmem:[%s6366_s6 + $0x24] ss:$8 sps:$4 sm:$0xff]  }
 0x408   :  { %v1985_v21 = vpack.c.bf16 %v4120_v1, %v4119_v17  ;;  %v1915_v55 = vsel %vm1910_vm9, %v4069_v50, %v4119_v17  ;;  %v1916_v14 = vsel %vm1910_vm9, %v4070_v45, %v4120_v1  ;;  %v1917_v50 = vsel %vm1910_vm9, %v4084_v11, %v4124_v33  ;;  %v4378_v11 = vld [vmem:[%s6366_s6 + $0x64] ss:$8 sps:$4 sm:$0xff]  }
 0x409   :  { %4127 = vrot.lane.b32.xlu1 %v4126_v39, %s4460_s15  ;;  %v1984_v32 = vpack.c.bf16 %v1916_v14, %v1915_v55  ;;  %v1988_v45 = vpack.c.bf16 %v1918_v41, %v1917_v50 }
 0x40c   :  { %2410 = vmatmul.mubr.bf16.vlgmr.msra.gmra.mrb[28].mxu1 %v1976_v62  ;;  %v4382_v62 = vld [vmem:[%s6366_s6 + $0x80] ss:$8 sps:$4 sm:$0xff]  }
 0x40d   :  { %3440 = vmatprep.mubr.msk.bf16.mxu1 %vm2271_vm10, %v1981_v59  ;;  %2626 = vmatpush1.bf16.msra.mxu1 %v4358_v10 }
 0x40e   :  { %2627 = vmatprep.subr.bf16.mxu1 %v4363_v53 }
 0x411   :  { %2628 = vmatpush1.bf16.msra.mxu1 %v4361_v13 }
 0x412   :  { %2629 = vmatprep.subr.bf16.mxu1 %v4366_v58 }
 0x414   :  { %2420 = vmatmul.mubr.bf16.gmra.mrb[32].mxu1 %v1980_v20  ;;  %v1994_v20 = vld [vmem:[%s6367_s5] sm:$0x3]  ;;  %s4461_s5 = smov 48  }
 0x415   :  { %3441 = vmatprep.mubr.msk.bf16.mxu1 %vm2271_vm10, %v1985_v21  ;;  %2630 = vmatpush1.bf16.msra.mxu1 %v4364_v34  ;;  %v6140_v16 = vrot.slane %v1994_v20, %v566_v52  ;;  %v6144_v9 = vrot.slane %v1994_v20, %v570_v61 }
 0x416   :  { %2631 = vmatprep.subr.bf16.mxu1 %v4369_v35 }
 0x419   :  { %2632 = vmatpush1.bf16.msra.mxu1 %v4367_v2 }
 0x41a   :  { %2633 = vmatprep.subr.bf16.mxu1 %v4372_v6 }
 0x41c   :  { %2430 = vmatmul.mubr.bf16.gmra.mrb[36].mxu1 %v1984_v32 }
 0x41d   :  { %3442 = vmatprep.mubr.msk.bf16.mxu1 %vm2271_vm10, %v1989_v27  ;;  %2634 = vmatpush1.bf16.msra.mxu1 %v4370_v54 }
 0x41e   :  { %2635 = vmatprep.subr.bf16.mxu1 %v4375_v23 }
 0x421   :  { %2636 = vmatpush1.bf16.msra.mxu1 %v4373_v56 }
 0x422   :  { %2637 = vmatprep.subr.bf16.mxu1 %v4378_v11 }
 0x424   :  { %2440 = vmatmul.mubr.bf16.gmra.mrb[40].mxu1 %v1988_v45 }
 0x425   :  { %2638 = vmatpush1.bf16.msra.mxu1 %v4376_v40 }
 0x426   :  { %2639 = vmatprep.subr.bf16.mxu1 %v4381_v63 }
 0x429   :  { %2640 = vmatpush1.bf16.msra.mxu1 %v4379_v8 }
 0x42a   :  { %2641 = vmatprep.subr.bf16.mxu1 %v4384_v48 }
 0x42d   :  { %2642 = vmatpush1.bf16.msra.mxu1 %v4382_v62 }
 0x42e   :  { %2643 = vmatprep.subr.bf16.mxu1 %v4387_v0 }
 0x431   :  { %2644 = vmatpush1.bf16.msra.mxu1 %v4385_v22 }
 0x47b   :  { %v4128_v7 = vpop.permute.xlu1 %4127 }
 0x47c   :  { %v4130_v28 = vunpack.i.h.bf16 %v4128_v7  ;;  %v4129_v38 = vunpack.i.l.bf16 %v4128_v7 }
 0x47e   :  { %v1993_v31 = vpack.c.bf16 %v4130_v28, %v4129_v38  ;;  %v1919_v37 = vsel %vm1910_vm9, %v4099_v18, %v4129_v38  ;;  %v1920_v15 = vsel %vm1910_vm9, %v4100_v4, %v4130_v28 }
 0x47f   :  { %v1992_v25 = vpack.c.bf16 %v1920_v15, %v1919_v37 }
 0x480   :  { %3443 = vmatprep.mubr.msk.bf16.mxu1 %vm2271_vm10, %v1993_v31 }
 0x481   :  { %2450 = vmatmul.mubr.bf16.gmra.mrb[44].mxu1 %v1992_v25 }
 0x4df   :  { %v2411_v18 = vpop.f32.mrb[28].mxu1 }
 0x4e0   :  { %v3642_v29 = vadd.f32 %v2411_v18, %v6140_v16  ;;  %v2413_v4 = vpop.f32.mrb[29].mxu1 }
 0x4e1   :  { %v3643_v46 = vadd.f32 %v2413_v4, %v6144_v9  ;;  %v2415_v43 = vpop.f32.mrb[30].mxu1 }
 0x4e2   :  { %v3644_v24 = vadd.f32 %v2415_v43, %v6140_v16  ;;  %v2417_v19 = vpop.f32.mrb[31].mxu1  ;;  %v2460_v42 = vmax.f32 %v3642_v29, 0.0 }
 0x4e3   :  { %v3645_v47 = vadd.f32 %v2417_v19, %v6144_v9  ;;  %v2461_v52 = vmax.f32 %v3643_v46, 0.0 }
 0x4e4   :  { %v2462_v5 = vmax.f32 %v3644_v24, 0.0 }
 0x4e5   :  { %v2463_v60 = vmax.f32 %v3645_v47, 0.0 }
 0x4e6   :  { %v2480_v12 = vmax.f32 %v2460_v42, %v2462_v5 }
 0x4e7   :  { %v2481_v44 = vmax.f32 %v2461_v52, %v2463_v60  ;;  %v2421_v61 = vpop.f32.mrb[32].mxu1 }
 0x4e8   :  { %v3646_v36 = vadd.f32 %v2421_v61, %v6140_v16  ;;  %v2423_v30 = vpop.f32.mrb[33].mxu1 }
 0x4e9   :  { %v3647_v49 = vadd.f32 %v2423_v30, %v6144_v9  ;;  %v2425_v3 = vpop.f32.mrb[34].mxu1 }
 0x4ea   :  { %v3648_v39 = vadd.f32 %v2425_v3, %v6140_v16  ;;  %v2427_v10 = vpop.f32.mrb[35].mxu1  ;;  %v2464_v59 = vmax.f32 %v3646_v36, 0.0 }
 0x4eb   :  { %v3649_v53 = vadd.f32 %v2427_v10, %v6144_v9  ;;  %v2465_v13 = vmax.f32 %v3647_v49, 0.0 }
 0x4ec   :  { %v2466_v57 = vmax.f32 %v3648_v39, 0.0 }
 0x4ed   :  { %v2467_v58 = vmax.f32 %v3649_v53, 0.0 }
 0x4ee   :  { %v2482_v1 = vmax.f32 %v2464_v59, %v2466_v57 }
 0x4ef   :  { %v2483_v17 = vmax.f32 %v2465_v13, %v2467_v58  ;;  %v2431_v34 = vpop.f32.mrb[36].mxu1  ;;  %v4388_v13 = vld [vmem:[%s6368_s7 + $0x40] sm:$0xff]  }
 0x4f0   :  { %v2510_v35 = vpack.c.bf16 %v2482_v1, %v2480_v12  ;;  %v3650_v21 = vadd.f32 %v2431_v34, %v6140_v16  ;;  %v2433_v26 = vpop.f32.mrb[37].mxu1  ;;  %v4389_v58 = vld [vmem:[%s6368_s7] sm:$0xff]   ;;  %3512 = vmatprep.subr.bf16.mxu1 %v4388_v13  ;;  %v4390_v1 = vld [vmem:[%s6368_s7 + $0x48] sm:$0xff]   ;;  %v4392_v34 = vld [vmem:[%s6368_s7 + $0x50] sm:$0xff]  }
 0x4f1   :  { %v2511_v2 = vpack.c.bf16 %v2483_v17, %v2481_v44  ;;  %v3651_v6 = vadd.f32 %v2433_v26, %v6144_v9  ;;  %v2435_v51 = vpop.f32.mrb[38].mxu1  ;;  %v4391_v17 = vld [vmem:[%s6368_s7 + $0x8] sm:$0xff]   ;;  %v4410_v13 = vld [vmem:[%s6368_s7 + $0xb0] sm:$0xff]  }
 0x4f2   :  { %v3652_v33 = vadd.f32 %v2435_v51, %v6140_v16  ;;  %v2437_v55 = vpop.f32.mrb[39].mxu1  ;;  %v2468_v54 = vmax.f32 %v3650_v21, 0.0 }
 0x4f3   :  { %v3653_v14 = vadd.f32 %v2437_v55, %v6144_v9  ;;  %3464 = vmatprep.mubr.msk.bf16.mxu1 %vm417_vm2, %v2511_v2  ;;  %v2469_v27 = vmax.f32 %v3651_v6, 0.0  ;;  %v4395_v55 = vld [vmem:[%s6368_s7 + $0x18] sm:$0xff]  }
 0x4f4   :  { %v2470_v32 = vmax.f32 %v3652_v33, 0.0  ;;  %2658 = vmatmul.mubr.bf16.vlgmr.msra.gmra.mrb[48].mxu1 %v2510_v35  ;;  %v4393_v35 = vld [vmem:[%s6368_s7 + $0x10] sm:$0xff]   ;;  %v4394_v33 = vld [vmem:[%s6368_s7 + $0x58] sm:$0xff]  }
 0x4f5   :  { %v2471_v50 = vmax.f32 %v3653_v14, 0.0  ;;  %3513 = vmatpush3.bf16.msra.mxu1 %v4389_v58  ;;  %v4396_v14 = vld [vmem:[%s6368_s7 + $0x60] sm:$0xff]   ;;  %v4411_v58 = vld [vmem:[%s6368_s7 + $0xb8] sm:$0xff]  }
 0x4f6   :  { %v2484_v41 = vmax.f32 %v2468_v54, %v2470_v32  ;;  %3514 = vmatprep.subr.bf16.mxu1 %v4390_v1  ;;  %v4397_v54 = vld [vmem:[%s6368_s7 + $0x20] sm:$0xff]   ;;  %v4398_v32 = vld [vmem:[%s6368_s7 + $0x68] sm:$0xff]  }
 0x4f7   :  { %v2485_v45 = vmax.f32 %v2469_v27, %v2471_v50  ;;  %v2441_v23 = vpop.f32.mrb[40].mxu1  ;;  %v4399_v27 = vld [vmem:[%s6368_s7 + $0x28] sm:$0xff]   ;;  %v4400_v50 = vld [vmem:[%s6368_s7 + $0x70] sm:$0xff]   ;;  %v4412_v1 = vld [vmem:[%s6368_s7 + $0xc0] sm:$0xff]  }
 0x4f8   :  { %v3654_v56 = vadd.f32 %v2441_v23, %v6140_v16  ;;  %v2443_v11 = vpop.f32.mrb[41].mxu1 }
 0x4f9   :  { %v3655_v40 = vadd.f32 %v2443_v11, %v6144_v9  ;;  %v2445_v63 = vpop.f32.mrb[42].mxu1  ;;  %3515 = vmatpush3.bf16.msra.mxu1 %v4391_v17  ;;  %v4401_v11 = vld [vmem:[%s6368_s7 + $0x30] sm:$0xff]  }
 0x4fa   :  { %v3656_v8 = vadd.f32 %v2445_v63, %v6140_v16  ;;  %v2447_v48 = vpop.f32.mrb[43].mxu1  ;;  %v2472_v0 = vmax.f32 %v3654_v56, 0.0  ;;  %3516 = vmatprep.subr.bf16.mxu1 %v4392_v34  ;;  %v4402_v63 = vld [vmem:[%s6368_s7 + $0x78] sm:$0xff]   ;;  %v4415_v34 = vld [vmem:[%s6369_s9 + $0x10] sm:$0xff]  }
 0x4fb   :  { %v3657_v62 = vadd.f32 %v2447_v48, %v6144_v9  ;;  %v2473_v7 = vmax.f32 %v3655_v40, 0.0 }
 0x4fc   :  { %v2474_v22 = vmax.f32 %v3656_v8, 0.0  ;;  %v4403_v8 = vld [vmem:[%s6368_s7 + $0x38] sm:$0xff]  }
 0x4fd   :  { %v2475_v28 = vmax.f32 %v3657_v62, 0.0  ;;  %3517 = vmatpush3.bf16.msra.mxu1 %v4393_v35  ;;  %v4462_v62 = vmov 0  }
 0x4fe   :  { %v2486_v38 = vmax.f32 %v2472_v0, %v2474_v22  ;;  %3518 = vmatprep.subr.bf16.mxu1 %v4394_v33  ;;  %v4419_v33 = vld [vmem:[%s6369_s9 + $0x30] sm:$0xff]  }
 0x4ff   :  { %v2487_v31 = vmax.f32 %v2473_v7, %v2475_v28 }
 0x500   :  { %v2512_v37 = vpack.c.bf16 %v2486_v38, %v2484_v41 }
 0x501   :  { %v2513_v15 = vpack.c.bf16 %v2487_v31, %v2485_v45  ;;  %3519 = vmatpush3.bf16.msra.mxu1 %v4395_v55  ;;  %v4420_v55 = vld [vmem:[%s6369_s9 + $0x38] ss:$0 sps:$4 sm:$0xff]  }
 0x502   :  { %3520 = vmatprep.subr.bf16.mxu1 %v4396_v14  ;;  %v3122_v14 = vsel %vm1508_vm3, %v4420_v55, 0 }
 0x503   :  { %3465 = vmatprep.mubr.msk.bf16.mxu1 %vm417_vm2, %v2513_v15 }
 0x504   :  { %2668 = vmatmul.mubr.bf16.gmra.mrb[52].mxu1 %v2512_v37 }
 0x505   :  { %3521 = vmatpush3.bf16.msra.mxu1 %v4397_v54  ;;  %v4421_v54 = vld [vmem:[%s6370_s11] sm:$0xff]  }
 0x506   :  { %3522 = vmatprep.subr.bf16.mxu1 %v4398_v32  ;;  %v4422_v32 = vld [vmem:[%s6370_s11 + $0x8] sm:$0xff]  }
 0x509   :  { %3523 = vmatpush3.bf16.msra.mxu1 %v4399_v27  ;;  %v4423_v27 = vld [vmem:[%s6370_s11 + $0x10] sm:$0xff]  }
 0x50a   :  { %3524 = vmatprep.subr.bf16.mxu1 %v4400_v50  ;;  %v4424_v50 = vld [vmem:[%s6370_s11 + $0x18] sm:$0xff]  }
 0x50d   :  { %3525 = vmatpush3.bf16.msra.mxu1 %v4401_v11 }
 0x50e   :  { %3526 = vmatprep.subr.bf16.mxu1 %v4402_v63 }
 0x511   :  { %3527 = vmatpush3.bf16.msra.mxu1 %v4403_v8 }
 0x512   :  { %3008 = vmatprep.subr.bf16.mxu1 %v4462_v62 }
 0x554   :  { %v2451_v25 = vpop.f32.mrb[44].mxu1 }
 0x555   :  { %v3658_v20 = vadd.f32 %v2451_v25, %v6140_v16  ;;  %v2453_v18 = vpop.f32.mrb[45].mxu1 }
 0x556   :  { %v3659_v29 = vadd.f32 %v2453_v18, %v6144_v9  ;;  %v2455_v4 = vpop.f32.mrb[46].mxu1  ;;  %v4413_v18 = vld [vmem:[%s6369_s9] sm:$0xff]  }
 0x557   :  { %v3660_v46 = vadd.f32 %v2455_v4, %v6140_v16  ;;  %v2457_v43 = vpop.f32.mrb[47].mxu1  ;;  %v2476_v19 = vmax.f32 %v3658_v20, 0.0  ;;  %v4464_v20 = vmov 0.0  }
 0x558   :  { %v3661_v24 = vadd.f32 %v2457_v43, %v6144_v9  ;;  %v2477_v42 = vmax.f32 %v3659_v29, 0.0  ;;  %3550 = vmatprep.subr.bf16.mxu0 %v4464_v20  ;;  %v4414_v29 = vld [vmem:[%s6369_s9 + $0x8] sm:$0xff]   ;;  %3566 = vmatprep.mubr.msk.bf16.mxu0 %vm4465_vm14, %v4464_v20 }
 0x559   :  { %v2478_v47 = vmax.f32 %v3660_v46, 0.0  ;;  %3551 = vmatpush3.bf16.msra.mxu0 %v4413_v18 }
 0x55a   :  { %v2479_v5 = vmax.f32 %v3661_v24, 0.0  ;;  %3552 = vmatprep.subr.bf16.mxu0 %v4464_v20 }
 0x55b   :  { %v2488_v52 = vmax.f32 %v2476_v19, %v2478_v47 }
 0x55c   :  { %v2489_v60 = vmax.f32 %v2477_v42, %v2479_v5 }
 0x55d   :  { %v2514_v44 = vpack.c.bf16 %v2488_v52, %v2488_v52  ;;  %3553 = vmatpush3.bf16.msra.mxu0 %v4414_v29 }
 0x55e   :  { %v2515_v12 = vpack.c.bf16 %v2489_v60, %v2489_v60  ;;  %3554 = vmatprep.subr.bf16.mxu0 %v4464_v20 }
 0x560   :  { %3466 = vmatprep.mubr.msk.bf16.mxu1 %vm417_vm2, %v2515_v12 }
 0x561   :  { %2678 = vmatmul.mubr.bf16.gmra.mrb[56].mxu1 %v2514_v44  ;;  %3555 = vmatpush3.bf16.msra.mxu0 %v4415_v34 }
 0x562   :  { %3556 = vmatprep.subr.bf16.mxu0 %v4464_v20 }
 0x5c7   :  { %v6169_v61 = vpop.f32.mrb[48].mxu1 }
 0x5c8   :  { %v2661_v36 = vpop.f32.mrb[49].mxu1 }
 0x5c9   :  { %v4151_v30 = vpack.i.bf16 %v2661_v36, %v6169_v61  ;;  %v2663_v16 = vpop.f32.mrb[50].mxu1 }
 0x5ca   :  { %v2665_v49 = vpop.f32.mrb[51].mxu1 }
 0x5cb   :  { %v4131_v3 = vpack.i.bf16 %v2665_v49, %v2663_v16 }
 0x5cd   :  { %4132 = vrot.lane.b32.xlu0 %v4131_v3, %s4461_s5 }
 0x5d7   :  { %v6173_v9 = vpop.f32.mrb[52].mxu1 }
 0x5d8   :  { %v2671_v39 = vpop.f32.mrb[53].mxu1 }
 0x5d9   :  { %v4136_v10 = vpack.i.bf16 %v2671_v39, %v6173_v9  ;;  %v6176_v53 = vpop.f32.mrb[54].mxu1 }
 0x5da   :  { %v2675_v59 = vpop.f32.mrb[55].mxu1 }
 0x5db   :  { %v4141_v57 = vpack.i.bf16 %v2675_v59, %v6176_v53  ;;  %4137 = vrot.lane.b32.xlu1 %v4136_v10, %s4461_s5  ;;  %v4406_v10 = vld [vmem:[%s6368_s7 + $0x90] sm:$0xff]   ;;  %v4408_v59 = vld [vmem:[%s6368_s7 + $0xa0] sm:$0xff]  }
 0x5dd   :  { %4142 = vrot.lane.b32.xlu0 %v4141_v57, %s4461_s5  ;;  %v4409_v57 = vld [vmem:[%s6368_s7 + $0xa8] sm:$0xff]  }
 0x5e1   :  { %4152 = vrot.lane.b32.xlu0 %v4151_v30, %s4461_s5 }
 0x634   :  { %v6200_v21 = vpop.f32.mrb[56].mxu1 }
 0x635   :  { %v2681_v26 = vpop.f32.mrb[57].mxu1 }
 0x636   :  { %v4146_v2 = vpack.i.bf16 %v2681_v26, %v6200_v21  ;;  %v2683_v6 = vpop.f32.mrb[58].mxu1 }
 0x637   :  { %v2684_v51 = vpop.f32.mrb[59].mxu1  ;;  %v4417_v6 = vld [vmem:[%s6369_s9 + $0x20] sm:$0xff]  }
 0x638   :  { %4147 = vrot.lane.b32.xlu1 %v4146_v2, %s4461_s5  ;;  %v4416_v2 = vld [vmem:[%s6369_s9 + $0x18] sm:$0xff]   ;;  %v4418_v51 = vld [vmem:[%s6369_s9 + $0x28] sm:$0xff]  }
 0x639   :  { %3557 = vmatpush3.bf16.msra.mxu0 %v4416_v2 }
 0x63a   :  { %3558 = vmatprep.subr.bf16.mxu0 %v4464_v20 }
 0x63d   :  { %3559 = vmatpush3.bf16.msra.mxu0 %v4417_v6 }
 0x63e   :  { %3560 = vmatprep.subr.bf16.mxu0 %v4464_v20 }
 0x63f   :  { %v4133_v41 = vpop.permute.xlu0 %4132 }
 0x640   :  { %v4135_v45 = vunpack.i.h.bf16 %v4133_v41  ;;  %v4134_v23 = vunpack.i.l.bf16 %v4133_v41 }
 0x641   :  { %3561 = vmatpush3.bf16.msra.mxu0 %v4418_v51 }
 0x642   :  { %v2718_v56 = vsel %vm2716_vm11, %v4134_v23, %v4135_v45  ;;  %3562 = vmatprep.subr.bf16.mxu0 %v4464_v20 }
 0x643   :  { %v2728_v40 = vmax.f32 %v2663_v16, %v2718_v56 }
 0x645   :  { %2733 = vrot.lane.b32.xlu1 %v2728_v40, %s4460_s15  ;;  %s4463_s15 = smov 112   ;;  %3563 = vmatpush3.bf16.msra.mxu0 %v4419_v33  ;;  %v3467_v40 = vld [vmem:[%s6371_s8] ss:$0 sm:$0xff] }
 0x646   :  { %3564 = vmatprep.subr.bf16.mxu0 %v4464_v20 }
 0x649   :  { %3565 = vmatpush3.bf16.msra.mxu0 %v3122_v14 }
 0x64d   :  { %v4138_v48 = vpop.permute.xlu1 %4137 }
 0x64e   :  { %v4140_v0 = vunpack.i.h.bf16 %v4138_v48  ;;  %v4139_v22 = vunpack.i.l.bf16 %v4138_v48 }
 0x64f   :  { %v4143_v7 = vpop.permute.xlu0 %4142 }
 0x650   :  { %v4145_v28 = vunpack.i.h.bf16 %v4143_v7  ;;  %v4144_v38 = vunpack.i.l.bf16 %v4143_v7  ;;  %v2719_v31 = vsel %vm2716_vm11, %v4139_v22, %v4140_v0 }
 0x651   :  { %v2729_v37 = vmax.f32 %v6173_v9, %v2719_v31  ;;  %v4404_v9 = vld [vmem:[%s6368_s7 + $0x80] sm:$0xff]   ;;  %v4426_v31 = vld [vmem:[%s6370_s11 + $0x28] ss:$0 sps:$4 sm:$0x33]  }
 0x652   :  { %v2720_v15 = vsel %vm2716_vm11, %v4144_v38, %v4145_v28  ;;  %v4425_v38 = vld [vmem:[%s6370_s11 + $0x20] sm:$0xff]  }
 0x653   :  { %2737 = vrot.lane.b32.xlu0 %v2729_v37, %s4455_s20  ;;  %v2730_v25 = vmax.f32 %v6176_v53, %v2720_v15  ;;  %v4153_v47 = vpop.permute.xlu0 %4152  ;;  %v4407_v53 = vld [vmem:[%s6368_s7 + $0x98] sm:$0xff]   ;;  %v3221_v37 = vsel %vm2287_vm8, %v4426_v31, 0  ;;  %v3494_v15 = vld [vmem:[%s6372_s10] ss:$0 sm:$0xff] }
 0x654   :  { %v4155_v42 = vunpack.i.h.bf16 %v4153_v47  ;;  %v4154_v5 = vunpack.i.l.bf16 %v4153_v47 }
 0x655   :  { %2741 = vrot.lane.b32.xlu1 %v2730_v25, %s4463_s15 }
 0x656   :  { %v2717_v52 = vsel %vm2716_vm11, %v4154_v5, %v4155_v42 }
 0x657   :  { %v2727_v12 = vmax.f32 %v6169_v61, %v2717_v52  ;;  %v4405_v61 = vld [vmem:[%s6368_s7 + $0x88] sm:$0xff]  }
 0x6aa   :  { %v4148_v4 = vpop.permute.xlu1 %4147 }
 0x6ab   :  { %v4150_v46 = vunpack.i.h.bf16 %v4148_v4  ;;  %v4149_v43 = vunpack.i.l.bf16 %v4148_v4 }
 0x6ad   :  { %v2721_v24 = vsel %vm2716_vm11, %v4149_v43, %v4150_v46 }
 0x6ae   :  { %v2731_v19 = vmax.f32 %v6200_v21, %v2721_v24 }
 0x6b0   :  { %2745 = vrot.lane.b32.xlu0 %v2731_v19, %s4454_s23 }
 0x6b7   :  { %v2734_v60 = vpop.permute.xlu1 %2733 }
 0x6b8   :  { %v2748_v30 = vsel %vm1910_vm9, %v2727_v12, %v2734_v60 }
 0x6b9   :  { %v2803_v39 = vpack.c.bf16 %v2748_v30, %v2748_v30 }
 0x6c5   :  { %v2738_v44 = vpop.permute.xlu0 %2737 }
 0x6c6   :  { %v2749_v36 = vsel %vm417_vm2, %v2734_v60, %v2738_v44 }
 0x6c7   :  { %v2742_v16 = vpop.permute.xlu1 %2741 }
 0x6c8   :  { %v2751_v49 = vsel %vm2750_vm12, %v2749_v36, %v2742_v16 }
 0x6c9   :  { %v2804_v3 = vpack.c.bf16 %v2751_v49, %v2751_v49 }
 0x6cb   :  { %3000 = vmatprep.mubr.bf16.mxu1 %v2804_v3 }
 0x6cc   :  { %3001 = vmatmul.mubr.bf16.vlgmr.msra.gmra.mrb[60].mxu1 %v2803_v39 }
 0x6cd   :  { %3009 = vmatpush1.bf16.msra.mxu1 %v4404_v9 }
 0x6ce   :  { %3010 = vmatprep.subr.bf16.mxu1 %v4462_v62 }
 0x6d1   :  { %3011 = vmatpush1.bf16.msra.mxu1 %v4405_v61 }
 0x6d2   :  { %3012 = vmatprep.subr.bf16.mxu1 %v4462_v62 }
 0x6d5   :  { %3013 = vmatpush1.bf16.msra.mxu1 %v4406_v10 }
 0x6d6   :  { %3014 = vmatprep.subr.bf16.mxu1 %v4462_v62 }
 0x6d9   :  { %3015 = vmatpush1.bf16.msra.mxu1 %v4407_v53 }
 0x6da   :  { %3016 = vmatprep.subr.bf16.mxu1 %v4462_v62 }
 0x6dd   :  { %3017 = vmatpush1.bf16.msra.mxu1 %v4408_v59 }
 0x6de   :  { %3018 = vmatprep.subr.bf16.mxu1 %v4462_v62 }
 0x6e1   :  { %3019 = vmatpush1.bf16.msra.mxu1 %v4409_v57 }
 0x6e2   :  { %3020 = vmatprep.subr.bf16.mxu1 %v4462_v62 }
 0x6e5   :  { %3021 = vmatpush1.bf16.msra.mxu1 %v4410_v13 }
 0x6e6   :  { %3022 = vmatprep.subr.bf16.mxu1 %v4462_v62 }
 0x6e9   :  { %3023 = vmatpush1.bf16.msra.mxu1 %v4411_v58 }
 0x6ea   :  { %3024 = vmatprep.subr.bf16.mxu1 %v4462_v62 }
 0x6ed   :  { %3025 = vmatpush1.bf16.msra.mxu1 %v4412_v1 }
 0x6ee   :  { %3570 = vmatprep.subr.bf16.mxu1 %v4464_v20 }
 0x722   :  { %v2746_v17 = vpop.permute.xlu0 %2745 }
 0x723   :  { %v2752_v35 = vsel %vm388_vm1, %v2742_v16, %v2746_v17  ;;  %v2806_v21 = vpack.c.bf16 %v2746_v17, %v2746_v17 }
 0x724   :  { %v2805_v26 = vpack.c.bf16 %v2752_v35, %v2752_v35 }
 0x725   :  { %3493 = vmatprep.mubr.msk.bf16.mxu1 %vm2964_vm13, %v2806_v21 }
 0x726   :  { %3041 = vmatmul.mubr.bf16.vlgmr.msra.gmra.mrb[64].mxu1 %v2805_v26 }
 0x727   :  { %3582 = vmatprep.mubr.msk.bf16.mxu1 %vm4465_vm14, %v4464_v20  ;;  %3571 = vmatpush3.bf16.msra.mxu1 %v4421_v54 }
 0x728   :  { %3572 = vmatprep.subr.bf16.mxu1 %v4464_v20 }
 0x72b   :  { %3573 = vmatpush3.bf16.msra.mxu1 %v4422_v32 }
 0x72c   :  { %3574 = vmatprep.subr.bf16.mxu1 %v4464_v20 }
 0x72f   :  { %3575 = vmatpush3.bf16.msra.mxu1 %v4423_v27 }
 0x730   :  { %3576 = vmatprep.subr.bf16.mxu1 %v4464_v20 }
 0x733   :  { %3577 = vmatpush3.bf16.msra.mxu1 %v4424_v50 }
 0x734   :  { %3578 = vmatprep.subr.bf16.mxu1 %v4464_v20 }
 0x737   :  { %3579 = vmatpush3.bf16.msra.mxu1 %v4425_v38 }
 0x738   :  { %3580 = vmatprep.subr.bf16.mxu1 %v4464_v20  ;;  %v3504_v20 = vld [vmem:[%s6373_s12] ss:$0 sm:$0xff] }
 0x73b   :  { %3581 = vmatpush3.bf16.msra.mxu1 %v3221_v37 }
 0x79f   :  { %v3528_v41 = vpop.f32.mrb[60].mxu1 }
 0x7a0   :  { %v3529_v45 = vpop.f32.mrb[61].mxu1 }
 0x7a1   :  { %v3530_v23 = vadd.f32 %v3529_v45, %v3528_v41  ;;  %v3531_v56 = vpop.f32.mrb[62].mxu1 }
 0x7a2   :  { %v3532_v11 = vpop.f32.mrb[63].mxu1 }
 0x7a3   :  { %v3003_v63 = vadd.f32 %v3530_v23, %v3467_v40 }
 0x7f9   :  { %v3042_v8 = vpop.f32.mrb[64].mxu1 }
 0x7fa   :  { %v3043_v48 = vadd.f32 %v3042_v8, %v3003_v63  ;;  %v3044_v62 = vpop.f32.mrb[65].mxu1 }
 0x7fb   :  { %v3045_v0 = vpop.f32.mrb[66].mxu1 }
 0x7fc   :  { %v3048_v22 = vmax.f32 %v3043_v48, 0.0  ;;  %v3046_v7 = vpop.f32.mrb[67].mxu1 }
 0x7fe   :  { %v3064_v28 = vpack.c.bf16 %v3048_v22, %v3048_v22 }
 0x800   :  { %3567 = vmatmul.mubr.msk.bf16.vlgmr.msra.gmra.mrb[56].mxu0 %vm3117_vm15, %v3064_v28 }
 0x8d3   :  { %v3158_v25 = vpop.f32.mrb[56].mxu0 }
 0x8d4   :  { %v3159_v18 = vadd.f32 %v3494_v15, %v3158_v25  ;;  %v3568_v29 = vpop.f32.mrb[57].mxu0 }
 0x8d5   :  { %v3161_v4 = vpop.f32.mrb[58].mxu0 }
 0x8d6   :  { %v3164_v46 = vmax.f32 %v3159_v18, 0.0  ;;  %v3569_v43 = vpop.f32.mrb[59].mxu0 }
 0x8d8   :  { %v3176_v24 = vpack.c.bf16 %v3164_v46, %v3164_v46 }
 0x8da   :  { %3583 = vmatmul.mubr.msk.bf16.vlgmr.msra.gmra.mrb[68].mxu1 %vm1878_vm6, %v3176_v24 }
 0x9ad   :  { %v3257_v19 = vpop.f32.mrb[68].mxu1 }
 0x9ae   :  { %v3258_v47 = vadd.f32 %v3504_v20, %v3257_v19  ;;  %v3584_v42 = vpop.f32.mrb[69].mxu1 }
 0x9af   :  { %v3260_v5 = vpop.f32.mrb[70].mxu1 }
 0x9b0   :  { %v3585_v52 = vpop.f32.mrb[71].mxu1  ;;  %v3264_v60 = vsel %vm3263_vm0, %v3258_v47, -inf }
 0x9b1   :  { %3265 = vmax.xlane.f32.xlu1 %v3264_v60 }
 0xa3e   :  { %v3266_v12 = vpop.xlane.xlu1 %3265 }
 0xa3f   :  { %v3267_v44 = vsub.f32 %v3258_v47, %v3266_v12 }
 0xa41   :  { %v3268_v36 = vmul.f32 1.442695, %v3267_v44 }
 0xa43   :  { %4427 = vpow2.f32 %v3268_v36 }
 0xa4d   :  { %v4428_v30 = vpop.eup %4427 }
 0xa4e   :  { %v3270_v16 = vsel %vm3263_vm0, %v4428_v30, 0.0 }
 0xa4f   :  { %3271 = vadd.xlane.f32.xlu0 %v3270_v16 }
 0xadc   :  { %v3272_v49 = vpop.xlane.xlu0 %3271 }
 0xadd   :  { %4429 = vrcp.f32 %v3272_v49 }
 0xae7   :  { %v4430_v3 = vpop.eup %4429 }
 0xae8   :  { %v3274_v9 = vmul.f32 %v4430_v3, %v4428_v30 }
 0xaea   :  { %3275 = vst.msk [vmem:[%s6374_s13] sm:$0xff] %vm3263_vm0, %v3274_v9 }

</bundles_post_ra>
